<compile_context>
chip_gen: v7x
topology: tpu7x:2x2x1
jax: 0.10.0
libtpu: 0.0.40
codegen_flags: <defaults>
</compile_context>

<pallas_src>
import jax
import jax.numpy as jnp
from jax.experimental import pallas as pl
from jax.experimental.pallas import tpu as pltpu

NUM_MODELS = 3
IN_FEATS = 3
HIDDEN = 64
OUT_FEATS = 2
H3 = NUM_MODELS * HIDDEN        # 192  (fused hidden width)
O3 = NUM_MODELS * OUT_FEATS     # 6    (fused logits width)
K1 = 8                          # padded layer-1 contraction (2*IN_FEATS -> 8)

# Row ranges inside the packed main weight slab (all 8-sublane aligned).
_R_W1 = (0, K1)
_R_WL2 = (K1, K1 + H3)
_R_WR2 = (K1 + H3, K1 + 2 * H3)
_R_WL3 = (K1 + 2 * H3, K1 + 3 * H3)
_R_WR3 = (K1 + 3 * H3, K1 + 4 * H3)
W_MAIN_ROWS = K1 + 4 * H3       # 776


def ensemble_gnn_kernel(c_ref, invd_ref, x_ref, wm_ref, wo_ref, b_ref, out_ref):
    f32 = jnp.float32
    bf16 = jnp.bfloat16

    def mm(a, b):
        return jnp.dot(a, b, preferred_element_type=f32)

    C = c_ref[...]            # (N, N)  bf16 integer neighbour counts (exact)
    invd = invd_ref[...]      # (N, 1)  f32   1 / max(in_degree, 1)
    x = x_ref[...]            # (N, IN) bf16
    n = x.shape[0]

    # ---- layer 1: one fused K=8 matmul over [A@x, x, 0pad] -----------------
    agg = (mm(C, x) * invd).astype(bf16)                         # (N, IN)
    cat = jnp.concatenate(
        [agg, x, jnp.zeros((n, K1 - 2 * IN_FEATS), bf16)], axis=1)   # (N, 8)
    h = mm(cat, wm_ref[_R_W1[0]:_R_W1[1], :]) + b_ref[0:1, :]    # (N, H3) f32
    h = jnp.maximum(h, 0.0)
    # TODO(synk): dropout omitted (eval-mode identity); add PRNG masking for training.

    # ---- layers 2-3: ONE A-sweep per layer over the fused (N, H3) slab ------
    for (wl_lo, wl_hi), (wr_lo, wr_hi), brow in (
            (_R_WL2, _R_WR2, 1), (_R_WL3, _R_WR3, 2)):
        hb = h.astype(bf16)
        agg = (mm(C, hb) * invd).astype(bf16)                    # (N, H3)
        h = (mm(agg, wm_ref[wl_lo:wl_hi, :])
             + mm(hb, wm_ref[wr_lo:wr_hi, :])
             + b_ref[brow:brow + 1, :])
        h = jnp.maximum(h, 0.0)

    # ---- layer 4: associativity A @ (h @ Wl4); Wl4/Wr4 share one matmul -----
    hb = h.astype(bf16)
    t = mm(hb, wo_ref[...])                                      # (N, 2*O3) f32
    t_l = t[:, 0:O3].astype(bf16)
    logits = mm(C, t_l) * invd + t[:, O3:2 * O3] + b_ref[3:4, 0:O3]   # (N, O3)

    # ---- per-model 2-class log_softmax (closed form) + ensemble mean --------
    acc0 = jnp.zeros((n, 1), f32)
    acc1 = jnp.zeros((n, 1), f32)
    for m in range(NUM_MODELS):
        a = logits[:, 2 * m:2 * m + 1]
        b = logits[:, 2 * m + 1:2 * m + 2]
        d = b - a
        # stable softplus(d); softplus(-d) = softplus(d) - d
        sp = jnp.maximum(d, 0.0) + jnp.log(1.0 + jnp.exp(-jnp.abs(d)))
        acc0 = acc0 + sp
        acc1 = acc1 + (sp - d)
    out_ref[...] = jnp.concatenate([acc0, acc1], axis=1) * (-1.0 / NUM_MODELS)


def pack_params(params):
    """Per-model stacked params -> 3 packed kernel inputs (done once, cached)."""
    wl1, wr1, b1, wl2, wr2, b2, wl3, wr3, b3, wl4, wr4, b4 = params

    def cat_out(w):            # (M, din, dout) -> (din, M*dout)
        return jnp.concatenate([w[m] for m in range(NUM_MODELS)], axis=1)

    def cat_bias(b):           # (M, 1, dout) -> (1, M*dout)
        return jnp.concatenate([b[m] for m in range(NUM_MODELS)], axis=1)

    def block_diag(w):         # (M, din, dout) -> (M*din, M*dout)
        M, din, dout = w.shape
        out = jnp.zeros((M * din, M * dout), w.dtype)
        for m in range(M):
            out = out.at[m * din:(m + 1) * din, m * dout:(m + 1) * dout].set(w[m])
        return out

    # layer-1 weights stacked on the contraction axis, padded to 8 rows
    w1 = jnp.zeros((K1, H3), jnp.float32)
    w1 = w1.at[0:IN_FEATS, :].set(cat_out(wl1))
    w1 = w1.at[IN_FEATS:2 * IN_FEATS, :].set(cat_out(wr1))

    w_main = jnp.concatenate(
        [w1, block_diag(wl2), block_diag(wr2), block_diag(wl3), block_diag(wr3)],
        axis=0).astype(jnp.bfloat16)                             # (776, 192)
    w_out = jnp.concatenate([block_diag(wl4), block_diag(wr4)],
                            axis=1).astype(jnp.bfloat16)         # (192, 12)

    bias = jnp.zeros((4, H3), jnp.float32)
    bias = bias.at[0:1, :].set(cat_bias(b1))
    bias = bias.at[1:2, :].set(cat_bias(b2))
    bias = bias.at[2:3, :].set(cat_bias(b3))
    bias = bias.at[3:4, 0:O3].set(cat_bias(b4))                  # (4, 192)
    return w_main, w_out, bias


@jax.jit
def ensemble_gnn_forward(c_counts_bf16, inv_deg, x_bf16, w_main, w_out, bias):
    """c_counts_bf16: (N,N) neighbour counts; inv_deg: (N,1) f32; x_bf16: (N,IN)."""
    N = x_bf16.shape[0]
    flops = (2 * N * N * (IN_FEATS + 2 * H3 + O3)                 # A-sweeps
             + 2 * N * (K1 * H3 + 4 * H3 * H3 + H3 * 2 * O3))     # weight matmuls
    bytes_accessed = (N * N * 2 + N * 4 + N * IN_FEATS * 2
                      + w_main.size * 2 + w_out.size * 2 + bias.size * 4
                      + N * OUT_FEATS * 4)
    vmem = pl.BlockSpec(memory_space=pltpu.MemorySpace.VMEM)
    return pl.pallas_call(
        ensemble_gnn_kernel,
        out_shape=jax.ShapeDtypeStruct((N, OUT_FEATS), jnp.float32),
        in_specs=[vmem] * 6,
        out_specs=vmem,
        compiler_params=pltpu.CompilerParams(vmem_limit_bytes=32 * 1024 * 1024),
        cost_estimate=pl.CostEstimate(flops=flops,
                                      transcendentals=2 * NUM_MODELS * N,
                                      bytes_accessed=bytes_accessed),
    )(c_counts_bf16, inv_deg, x_bf16, w_main, w_out, bias)


def make_params(key):
    """Deterministic synthetic SAGEConv weights, stacked over NUM_MODELS.

    Per layer: wl_t (M, in, out) lin_l weight (pre-transposed), wr_t (M, in, out)
    lin_r weight, b (M, 1, out) lin_l bias.
    """
    dims = [(IN_FEATS, HIDDEN), (HIDDEN, HIDDEN), (HIDDEN, HIDDEN), (HIDDEN, OUT_FEATS)]
    params = []
    for (din, dout) in dims:
        key, k1, k2, k3 = jax.random.split(key, 4)
        scale = 1.0 / jnp.sqrt(jnp.float32(din))
        wl = jax.random.uniform(k1, (NUM_MODELS, din, dout), jnp.float32, -scale, scale)
        wr = jax.random.uniform(k2, (NUM_MODELS, din, dout), jnp.float32, -scale, scale)
        b = jax.random.uniform(k3, (NUM_MODELS, 1, dout), jnp.float32, -scale, scale)
        params += [wl, wr, b]
    return params


def reference_forward(A, x, params):
    """Pure-JAX f32 reference (matches the PyTorch module semantics, eval mode)."""
    outs = []
    for m in range(NUM_MODELS):
        h = x
        for layer in range(4):
            wl, wr, b = params[3 * layer], params[3 * layer + 1], params[3 * layer + 2]
            h = (A @ h) @ wl[m] + h @ wr[m] + b[m]
            if layer < 3:
                h = jnp.maximum(h, 0.0)
        outs.append(jax.nn.log_softmax(h, axis=1))
    return jnp.mean(jnp.stack(outs), axis=0)


if __name__ == "__main__":
    key = jax.random.PRNGKey(0)
    N = 64           # small number of nodes for the demo
    num_edges = 256

    k_x, k_src, k_dst, k_w = jax.random.split(key, 4)
    x = jax.random.normal(k_x, (N, IN_FEATS), jnp.float32)
    src = jax.random.randint(k_src, (num_edges,), 0, N)
    dst = jax.random.randint(k_dst, (num_edges,), 0, N)

    # Dense neighbour-count matrix from edge_index (glue, plain JAX).  The mean
    # normalization is an exact f32 row scale applied after each count matmul, so
    # the bf16 count matrix itself stays exact.  Zero-degree nodes get zero
    # aggregation (matches PyG mean-SAGEConv).
    counts = jnp.zeros((N, N), jnp.float32).at[dst, src].add(1.0)
    deg = jnp.sum(counts, axis=1, keepdims=True)
    inv_deg = 1.0 / jnp.maximum(deg, 1.0)
    A = counts * inv_deg                     # f32 reference aggregation matrix

    params = make_params(k_w)

    # One-time param fusion + dtype casts, hoisted out of the per-call path.
    w_main, w_out, bias = pack_params(params)
    counts_bf16 = counts.astype(jnp.bfloat16)
    x_bf16 = x.astype(jnp.bfloat16)

    out = ensemble_gnn_forward(counts_bf16, inv_deg, x_bf16, w_main, w_out, bias)
    out = jax.block_until_ready(out)

    ref = reference_forward(A, x, params)
    assert out.shape == (N, OUT_FEATS)
    # Matmul operands run in bf16 on the MXU (f32 accumulation, exact counts +
    # f32 row scale), so tolerance vs the pure-f32 reference is relaxed slightly.
    assert jnp.allclose(out, ref, atol=5e-2, rtol=5e-2), "mismatch vs pure-JAX reference"

    print("KERNEL_OK")
</pallas_src>

<mosaic_0001>
module attributes {stable_mosaic.version = 11 : i64} {
  func.func @ensemble_gnn_kernel(%arg0: memref<64x64xbf16, #tpu.memory_space<vmem>>, %arg1: memref<64x1xf32, #tpu.memory_space<vmem>>, %arg2: memref<64x3xbf16, #tpu.memory_space<vmem>>, %arg3: memref<776x192xbf16, #tpu.memory_space<vmem>>, %arg4: memref<192x12xbf16, #tpu.memory_space<vmem>>, %arg5: memref<4x192xf32, #tpu.memory_space<vmem>>, %arg6: memref<64x2xf32, #tpu.memory_space<vmem>>) attributes {dimension_semantics = [], scalar_prefetch = 0 : i64, scratch_operands = 0 : i64, tpu.core_type = #tpu.core_type<tc>} {
    %c0 = arith.constant 0 : index
    %c0_0 = arith.constant 0 : index
    %0 = vector.load %arg0[%c0, %c0_0] : memref<64x64xbf16, #tpu.memory_space<vmem>>, vector<64x64xbf16>
    %c0_1 = arith.constant 0 : index
    %c0_2 = arith.constant 0 : index
    %1 = vector.load %arg1[%c0_1, %c0_2] : memref<64x1xf32, #tpu.memory_space<vmem>>, vector<64x1xf32>
    %c0_3 = arith.constant 0 : index
    %c0_4 = arith.constant 0 : index
    %2 = vector.load %arg2[%c0_3, %c0_4] : memref<64x3xbf16, #tpu.memory_space<vmem>>, vector<64x3xbf16>
    %cst = arith.constant dense<0.000000e+00> : vector<64x3xf32>
    %3 = tpu.matmul %0, %2, %cst {dimension_numbers = #tpu.dot_dimension_numbers<[1], [0], [0], [1], [0, 0, 1, 1], [], []>} : vector<64x64xbf16>, vector<64x3xbf16>, vector<64x3xf32> -> vector<64x3xf32>
    %4 = vector.broadcast %1 : vector<64x1xf32> to vector<64x3xf32>
    %5 = arith.mulf %3, %4 : vector<64x3xf32>
    %6 = arith.truncf %5 : vector<64x3xf32> to vector<64x3xbf16>
    %cst_5 = arith.constant 0.000000e+00 : bf16
    %7 = vector.broadcast %cst_5 : bf16 to vector<64x2xbf16>
    %8 = tpu.concatenate %6, %2, %7 in 1 : vector<64x3xbf16>, vector<64x3xbf16>, vector<64x2xbf16> -> vector<64x8xbf16>
    %c0_6 = arith.constant 0 : index
    %c0_7 = arith.constant 0 : index
    %9 = vector.load %arg3[%c0_6, %c0_7] : memref<776x192xbf16, #tpu.memory_space<vmem>>, vector<8x192xbf16>
    %cst_8 = arith.constant dense<0.000000e+00> : vector<64x192xf32>
    %10 = tpu.matmul %8, %9, %cst_8 {dimension_numbers = #tpu.dot_dimension_numbers<[1], [0], [0], [1], [0, 0, 1, 1], [], []>} : vector<64x8xbf16>, vector<8x192xbf16>, vector<64x192xf32> -> vector<64x192xf32>
    %c0_9 = arith.constant 0 : index
    %c0_10 = arith.constant 0 : index
    %11 = vector.load %arg5[%c0_9, %c0_10] : memref<4x192xf32, #tpu.memory_space<vmem>>, vector<1x192xf32>
    %12 = vector.broadcast %11 : vector<1x192xf32> to vector<64x192xf32>
    %13 = arith.addf %10, %12 : vector<64x192xf32>
    %cst_11 = arith.constant 0.000000e+00 : f32
    %14 = vector.broadcast %cst_11 : f32 to vector<64x192xf32>
    %15 = arith.maximumf %13, %14 : vector<64x192xf32>
    %16 = arith.truncf %15 : vector<64x192xf32> to vector<64x192xbf16>
    %cst_12 = arith.constant dense<0.000000e+00> : vector<64x192xf32>
    %17 = tpu.matmul %0, %16, %cst_12 {dimension_numbers = #tpu.dot_dimension_numbers<[1], [0], [0], [1], [0, 0, 1, 1], [], []>} : vector<64x64xbf16>, vector<64x192xbf16>, vector<64x192xf32> -> vector<64x192xf32>
    %18 = vector.broadcast %1 : vector<64x1xf32> to vector<64x192xf32>
    %19 = arith.mulf %17, %18 : vector<64x192xf32>
    %20 = arith.truncf %19 : vector<64x192xf32> to vector<64x192xbf16>
    %c8 = arith.constant 8 : index
    %c0_13 = arith.constant 0 : index
    %21 = vector.load %arg3[%c8, %c0_13] : memref<776x192xbf16, #tpu.memory_space<vmem>>, vector<192x192xbf16>
    %cst_14 = arith.constant dense<0.000000e+00> : vector<64x192xf32>
    %22 = tpu.matmul %20, %21, %cst_14 {dimension_numbers = #tpu.dot_dimension_numbers<[1], [0], [0], [1], [0, 0, 1, 1], [], []>} : vector<64x192xbf16>, vector<192x192xbf16>, vector<64x192xf32> -> vector<64x192xf32>
    %c200 = arith.constant 200 : index
    %c0_15 = arith.constant 0 : index
    %23 = vector.load %arg3[%c200, %c0_15] : memref<776x192xbf16, #tpu.memory_space<vmem>>, vector<192x192xbf16>
    %cst_16 = arith.constant dense<0.000000e+00> : vector<64x192xf32>
    %24 = tpu.matmul %16, %23, %cst_16 {dimension_numbers = #tpu.dot_dimension_numbers<[1], [0], [0], [1], [0, 0, 1, 1], [], []>} : vector<64x192xbf16>, vector<192x192xbf16>, vector<64x192xf32> -> vector<64x192xf32>
    %25 = arith.addf %22, %24 : vector<64x192xf32>
    %c1 = arith.constant 1 : index
    %c0_17 = arith.constant 0 : index
    %26 = vector.load %arg5[%c1, %c0_17] : memref<4x192xf32, #tpu.memory_space<vmem>>, vector<1x192xf32>
    %27 = vector.broadcast %26 : vector<1x192xf32> to vector<64x192xf32>
    %28 = arith.addf %25, %27 : vector<64x192xf32>
    %cst_18 = arith.constant 0.000000e+00 : f32
    %29 = vector.broadcast %cst_18 : f32 to vector<64x192xf32>
    %30 = arith.maximumf %28, %29 : vector<64x192xf32>
    %31 = arith.truncf %30 : vector<64x192xf32> to vector<64x192xbf16>
    %cst_19 = arith.constant dense<0.000000e+00> : vector<64x192xf32>
    %32 = tpu.matmul %0, %31, %cst_19 {dimension_numbers = #tpu.dot_dimension_numbers<[1], [0], [0], [1], [0, 0, 1, 1], [], []>} : vector<64x64xbf16>, vector<64x192xbf16>, vector<64x192xf32> -> vector<64x192xf32>
    %33 = vector.broadcast %1 : vector<64x1xf32> to vector<64x192xf32>
    %34 = arith.mulf %32, %33 : vector<64x192xf32>
    %35 = arith.truncf %34 : vector<64x192xf32> to vector<64x192xbf16>
    %c392 = arith.constant 392 : index
    %c0_20 = arith.constant 0 : index
    %36 = vector.load %arg3[%c392, %c0_20] : memref<776x192xbf16, #tpu.memory_space<vmem>>, vector<192x192xbf16>
    %cst_21 = arith.constant dense<0.000000e+00> : vector<64x192xf32>
    %37 = tpu.matmul %35, %36, %cst_21 {dimension_numbers = #tpu.dot_dimension_numbers<[1], [0], [0], [1], [0, 0, 1, 1], [], []>} : vector<64x192xbf16>, vector<192x192xbf16>, vector<64x192xf32> -> vector<64x192xf32>
    %c584 = arith.constant 584 : index
    %c0_22 = arith.constant 0 : index
    %38 = vector.load %arg3[%c584, %c0_22] : memref<776x192xbf16, #tpu.memory_space<vmem>>, vector<192x192xbf16>
    %cst_23 = arith.constant dense<0.000000e+00> : vector<64x192xf32>
    %39 = tpu.matmul %31, %38, %cst_23 {dimension_numbers = #tpu.dot_dimension_numbers<[1], [0], [0], [1], [0, 0, 1, 1], [], []>} : vector<64x192xbf16>, vector<192x192xbf16>, vector<64x192xf32> -> vector<64x192xf32>
    %40 = arith.addf %37, %39 : vector<64x192xf32>
    %c2 = arith.constant 2 : index
    %c0_24 = arith.constant 0 : index
    %41 = vector.load %arg5[%c2, %c0_24] : memref<4x192xf32, #tpu.memory_space<vmem>>, vector<1x192xf32>
    %42 = vector.broadcast %41 : vector<1x192xf32> to vector<64x192xf32>
    %43 = arith.addf %40, %42 : vector<64x192xf32>
    %cst_25 = arith.constant 0.000000e+00 : f32
    %44 = vector.broadcast %cst_25 : f32 to vector<64x192xf32>
    %45 = arith.maximumf %43, %44 : vector<64x192xf32>
    %46 = arith.truncf %45 : vector<64x192xf32> to vector<64x192xbf16>
    %c0_26 = arith.constant 0 : index
    %c0_27 = arith.constant 0 : index
    %47 = vector.load %arg4[%c0_26, %c0_27] : memref<192x12xbf16, #tpu.memory_space<vmem>>, vector<192x12xbf16>
    %cst_28 = arith.constant dense<0.000000e+00> : vector<64x12xf32>
    %48 = tpu.matmul %46, %47, %cst_28 {dimension_numbers = #tpu.dot_dimension_numbers<[1], [0], [0], [1], [0, 0, 1, 1], [], []>} : vector<64x192xbf16>, vector<192x12xbf16>, vector<64x12xf32> -> vector<64x12xf32>
    %49 = vector.extract_strided_slice %48 {offsets = [0, 0], sizes = [64, 6], strides = [1, 1]} : vector<64x12xf32> to vector<64x6xf32>
    %50 = arith.truncf %49 : vector<64x6xf32> to vector<64x6xbf16>
    %cst_29 = arith.constant dense<0.000000e+00> : vector<64x6xf32>
    %51 = tpu.matmul %0, %50, %cst_29 {dimension_numbers = #tpu.dot_dimension_numbers<[1], [0], [0], [1], [0, 0, 1, 1], [], []>} : vector<64x64xbf16>, vector<64x6xbf16>, vector<64x6xf32> -> vector<64x6xf32>
    %52 = vector.broadcast %1 : vector<64x1xf32> to vector<64x6xf32>
    %53 = arith.mulf %51, %52 : vector<64x6xf32>
    %54 = vector.extract_strided_slice %48 {offsets = [0, 6], sizes = [64, 6], strides = [1, 1]} : vector<64x12xf32> to vector<64x6xf32>
    %55 = arith.addf %53, %54 : vector<64x6xf32>
    %c3 = arith.constant 3 : index
    %c0_30 = arith.constant 0 : index
    %56 = vector.load %arg5[%c3, %c0_30] : memref<4x192xf32, #tpu.memory_space<vmem>>, vector<1x6xf32>
    %57 = vector.broadcast %56 : vector<1x6xf32> to vector<64x6xf32>
    %58 = arith.addf %55, %57 : vector<64x6xf32>
    %cst_31 = arith.constant 0.000000e+00 : f32
    %59 = vector.broadcast %cst_31 : f32 to vector<64x1xf32>
    %cst_32 = arith.constant 0.000000e+00 : f32
    %60 = vector.broadcast %cst_32 : f32 to vector<64x1xf32>
    %61 = vector.extract_strided_slice %58 {offsets = [0, 0], sizes = [64, 1], strides = [1, 1]} : vector<64x6xf32> to vector<64x1xf32>
    %62 = vector.extract_strided_slice %58 {offsets = [0, 1], sizes = [64, 1], strides = [1, 1]} : vector<64x6xf32> to vector<64x1xf32>
    %63 = arith.subf %62, %61 : vector<64x1xf32>
    %cst_33 = arith.constant 0.000000e+00 : f32
    %64 = vector.broadcast %cst_33 : f32 to vector<64x1xf32>
    %65 = arith.maximumf %63, %64 : vector<64x1xf32>
    %66 = math.absf %63 : vector<64x1xf32>
    %cst_34 = arith.constant 0.000000e+00 : f32
    %67 = vector.broadcast %cst_34 : f32 to vector<64x1xf32>
    %68 = arith.subf %67, %66 : vector<64x1xf32>
    %69 = math.exp %68 : vector<64x1xf32>
    %cst_35 = arith.constant 1.000000e+00 : f32
    %70 = vector.broadcast %cst_35 : f32 to vector<64x1xf32>
    %71 = arith.addf %70, %69 : vector<64x1xf32>
    %72 = math.log %71 : vector<64x1xf32>
    %73 = arith.addf %65, %72 : vector<64x1xf32>
    %74 = arith.addf %59, %73 : vector<64x1xf32>
    %75 = arith.subf %73, %63 : vector<64x1xf32>
    %76 = arith.addf %60, %75 : vector<64x1xf32>
    %77 = vector.extract_strided_slice %58 {offsets = [0, 2], sizes = [64, 1], strides = [1, 1]} : vector<64x6xf32> to vector<64x1xf32>
    %78 = vector.extract_strided_slice %58 {offsets = [0, 3], sizes = [64, 1], strides = [1, 1]} : vector<64x6xf32> to vector<64x1xf32>
    %79 = arith.subf %78, %77 : vector<64x1xf32>
    %cst_36 = arith.constant 0.000000e+00 : f32
    %80 = vector.broadcast %cst_36 : f32 to vector<64x1xf32>
    %81 = arith.maximumf %79, %80 : vector<64x1xf32>
    %82 = math.absf %79 : vector<64x1xf32>
    %cst_37 = arith.constant 0.000000e+00 : f32
    %83 = vector.broadcast %cst_37 : f32 to vector<64x1xf32>
    %84 = arith.subf %83, %82 : vector<64x1xf32>
    %85 = math.exp %84 : vector<64x1xf32>
    %cst_38 = arith.constant 1.000000e+00 : f32
    %86 = vector.broadcast %cst_38 : f32 to vector<64x1xf32>
    %87 = arith.addf %86, %85 : vector<64x1xf32>
    %88 = math.log %87 : vector<64x1xf32>
    %89 = arith.addf %81, %88 : vector<64x1xf32>
    %90 = arith.addf %74, %89 : vector<64x1xf32>
    %91 = arith.subf %89, %79 : vector<64x1xf32>
    %92 = arith.addf %76, %91 : vector<64x1xf32>
    %93 = vector.extract_strided_slice %58 {offsets = [0, 4], sizes = [64, 1], strides = [1, 1]} : vector<64x6xf32> to vector<64x1xf32>
    %94 = vector.extract_strided_slice %58 {offsets = [0, 5], sizes = [64, 1], strides = [1, 1]} : vector<64x6xf32> to vector<64x1xf32>
    %95 = arith.subf %94, %93 : vector<64x1xf32>
    %cst_39 = arith.constant 0.000000e+00 : f32
    %96 = vector.broadcast %cst_39 : f32 to vector<64x1xf32>
    %97 = arith.maximumf %95, %96 : vector<64x1xf32>
    %98 = math.absf %95 : vector<64x1xf32>
    %cst_40 = arith.constant 0.000000e+00 : f32
    %99 = vector.broadcast %cst_40 : f32 to vector<64x1xf32>
    %100 = arith.subf %99, %98 : vector<64x1xf32>
    %101 = math.exp %100 : vector<64x1xf32>
    %cst_41 = arith.constant 1.000000e+00 : f32
    %102 = vector.broadcast %cst_41 : f32 to vector<64x1xf32>
    %103 = arith.addf %102, %101 : vector<64x1xf32>
    %104 = math.log %103 : vector<64x1xf32>
    %105 = arith.addf %97, %104 : vector<64x1xf32>
    %106 = arith.addf %90, %105 : vector<64x1xf32>
    %107 = arith.subf %105, %95 : vector<64x1xf32>
    %108 = arith.addf %92, %107 : vector<64x1xf32>
    %109 = tpu.concatenate %106, %108 in 1 : vector<64x1xf32>, vector<64x1xf32> -> vector<64x2xf32>
    %cst_42 = arith.constant -0.333333343 : f32
    %110 = vector.broadcast %cst_42 : f32 to vector<64x2xf32>
    %111 = arith.mulf %109, %110 : vector<64x2xf32>
    %c0_43 = arith.constant 0 : index
    %c0_44 = arith.constant 0 : index
    %112 = vector.load %arg6[%c0_43, %c0_44] : memref<64x2xf32, #tpu.memory_space<vmem>>, vector<64x2xf32>
    tpu.vector_store %arg6[%c0_43, %c0_44], %111 {strides = array<i32>} : memref<64x2xf32, #tpu.memory_space<vmem>>, vector<64x2xf32>,
    return
  }
}

</mosaic_0001>

<bundles_post_ra>
// kernel: ensemble_gnn_forward.1
= control target key start
LH: loop header
LB: loop body
LE: loop exit
PB: predicated region body
PF: predicated region fallthrough
CT: control target
= control target key end

     0   :  { %v2694_v1 = vmov 0   ;;  %vm92_vm0 = vcmask 523264   ;;  %s2695_s20 = smov 3   ;;  %vm276_vm1 = vcmask 1043456   ;;  %vm230_vm2 = vcmask 23552   ;;  %s2696_s19 = smov 122   ;;  %s3567_s2 = inlined_call_operand.vmem [shape: bf16[64,3], index: 2, kind: input, shape index: {}]   ;;  %s3568_s0 = inlined_call_operand.vmem [shape: bf16[64,64], index: 0, kind: input, shape index: {}]   ;;  %s3569_s1 = inlined_call_operand.vmem [shape: f32[64,1], index: 1, kind: input, shape index: {}]   ;;  %s3570_s3 = inlined_call_operand.vmem [shape: bf16[776,192], index: 3, kind: input, shape index: {}]   ;;  %s3571_s5 = inlined_call_operand.vmem [shape: f32[4,192], index: 5, kind: input, shape index: {}]   ;;  %s3572_s4 = inlined_call_operand.vmem [shape: bf16[192,12], index: 4, kind: input, shape index: {}]   ;;  %s3573_s6 = inlined_call_operand.vmem [shape: f32[64,2], index: 6, kind: output, shape index: {}]  }
   0x1   :  { %v2492_v0 = vld [vmem:[%s3567_s2] sm:$0xff]   ;;  %2490 = vset.pattern.permute.xlu0 %v2694_v1  ;;  %2491 = vset.pattern.permute.xlu1 %v2694_v1  ;;  %v2493_v2 = vld [vmem:[%s3567_s2 + $0x8] sm:$0xff]   ;;  %v2494_v3 = vld [vmem:[%s3567_s2 + $0x10] sm:$0xff]   ;;  %vm243_vm3 = vcmask 48128   ;;  %vm267_vm4 = vcmask 64512   ;;  %s2699_s27 = smov 124  }
   0x2   :  { %315 = vmatprep.mubr.bf16.mxu1 %v2694_v1  ;;  %2419 = vmatprep.subr.bf16.mxu0 %v2492_v0  ;;  %v2751_v4 = vld [vmem:[%s3568_s0] sm:$0xff]   ;;  %v2495_v5 = vld [vmem:[%s3567_s2 + $0x18] sm:$0xff]   ;;  %v34_v7 = vld [vmem:[%s3569_s1 + $0x10] sm:$0xff]  ;;  %s2700_s28 = smov 127   ;;  %vm2211_vm5 = vcmask 7168   ;;  %vm2228_vm6 = vcmask 15360  }
   0x3   :  { %2420 = vmatpush3.bf16.msra.mxu0 %v2492_v0  ;;  %2427 = vmatprep.mubr.msk.bf16.mxu0 %vm92_vm0, %v2751_v4  ;;  %v32_v6 = vld [vmem:[%s3569_s1] sm:$0xff]  ;;  %v33_v8 = vld [vmem:[%s3569_s1 + $0x8] sm:$0xff]  ;;  %v35_v9 = vld [vmem:[%s3569_s1 + $0x18] sm:$0xff] }
   0x4   :  { %2421 = vmatprep.subr.bf16.mxu0 %v2493_v2  ;;  %172 = vperm.xlu0 %2490, %v32_v6   ;;  %v2773_v10 = vld [vmem:[%s3568_s0 + $0x8] sm:$0xff]   ;;  %v36_v11 = vld [vmem:[%s3569_s1 + $0x20] sm:$0xff]  ;;  %v2781_v12 = vld [vmem:[%s3568_s0 + $0x10] sm:$0xff]  }
   0x5   :  { %182 = vperm.xlu1 %2491, %v34_v7   ;;  %v37_v13 = vld [vmem:[%s3569_s1 + $0x28] sm:$0xff]  ;;  %v2793_v14 = vld [vmem:[%s3568_s0 + $0x18] sm:$0xff]   ;;  %v38_v15 = vld [vmem:[%s3569_s1 + $0x30] sm:$0xff] }
   0x6   :  { %v39_v16 = vld [vmem:[%s3569_s1 + $0x38] sm:$0xff]  ;;  %v249_v17 = vld [vmem:[%s3570_s3] sm:$0xff]  ;;  %v2504_v21 = vld [vmem:[%s3570_s3 + $0xcc] ss:$8 sps:$4 sm:$0xff]  }
   0x7   :  { %2422 = vmatpush3.bf16.msra.mxu0 %v2493_v2  ;;  %v2254_v18 = vcombine.high %v249_v17, %v249_v17  ;;  %v2253_v19 = vcombine.low %v249_v17, %v249_v17  ;;  %v2502_v40 = vld [vmem:[%s3570_s3 + $0xc8] ss:$8 sps:$4 sm:$0xff]   ;;  %v2507_v43 = vld [vmem:[%s3570_s3 + $0xdc] ss:$8 sps:$4 sm:$0xff]   ;;  %v2505_v52 = vld [vmem:[%s3570_s3 + $0xd8] ss:$8 sps:$4 sm:$0xff]  }
   0x8   :  { %2423 = vmatprep.subr.bf16.mxu0 %v2494_v3  ;;  %177 = vperm.xlu0 %2490, %v33_v8   ;;  %v2510_v55 = vld [vmem:[%s3570_s3 + $0xec] ss:$8 sps:$4 sm:$0xff]   ;;  %v2508_v59 = vld [vmem:[%s3570_s3 + $0xe8] ss:$8 sps:$4 sm:$0xff]   ;;  %v2513_v60 = vld [vmem:[%s3570_s3 + $0xfc] ss:$8 sps:$4 sm:$0xff]  }
   0x9   :  { %187 = vperm.xlu1 %2491, %v35_v9   ;;  %2255 = vmatprep.subr.msk.bf16.mxu1 %vm276_vm1, %v2254_v18  ;;  %v278_v20 = vsel %vm276_vm1, %v2253_v19, 0  ;;  %v2511_v63 = vld [vmem:[%s3570_s3 + $0xf8] ss:$8 sps:$4 sm:$0xff]   ;;  %v2522_v9 = vld [vmem:[%s3570_s3 + $0x12c] ss:$8 sps:$4 sm:$0xff]  }
   0xa   :  { %284 = vmatpush1.bf16.msra.mxu1 %v278_v20  ;;  %v2517_v8 = vld [vmem:[%s3570_s3 + $0x118] ss:$8 sps:$4 sm:$0xff]   ;;  %v2528_v18 = vld [vmem:[%s3570_s3 + $0x14c] ss:$8 sps:$4 sm:$0xff]   ;;  %v2526_v19 = vld [vmem:[%s3570_s3 + $0x148] ss:$8 sps:$4 sm:$0xff]  }
   0xb   :  { %2424 = vmatpush3.bf16.msra.mxu0 %v2494_v3  ;;  %657 = vmatprep.subr.bf16.mxu1 %v2504_v21  ;;  %v2523_v17 = vld [vmem:[%s3570_s3 + $0x138] ss:$8 sps:$4 sm:$0xff]   ;;  %v2531_v20 = vld [vmem:[%s3570_s3 + $0x15c] ss:$8 sps:$4 sm:$0xff]  }
   0xc   :  { %2425 = vmatprep.subr.bf16.mxu0 %v2495_v5  ;;  %222 = vrot.lane.b32.xlu0 %v2492_v0, %s2695_s20  ;;  %v2516_v0 = vld [vmem:[%s3570_s3 + $0x10c] ss:$8 sps:$4 sm:$0xff]   ;;  %v2529_v21 = vld [vmem:[%s3570_s3 + $0x158] ss:$8 sps:$4 sm:$0xff]  }
   0xd   :  { %192 = vperm.xlu1 %2491, %v36_v11  }
   0xf   :  { %2426 = vmatpush3.bf16.msra.mxu0 %v2495_v5 }
  0x10   :  { %197 = vperm.xlu0 %2490, %v37_v13   ;;  %v2520_v13 = vld [vmem:[%s3570_s3 + $0x128] ss:$8 sps:$4 sm:$0xff]  }
  0x11   :  { %224 = vrot.lane.b32.xlu1 %v2493_v2, %s2695_s20 }
  0x12   :  { %2428 = vmatmul.mubr.msk.bf16.vlgmr.msra.gmra.mrb[0].mxu0 %vm92_vm0, %v2773_v10 }
  0x13   :  { %2431 = vmatprep.mubr.msk.bf16.mxu0 %vm92_vm0, %v2781_v12 }
  0x14   :  { %202 = vperm.xlu0 %2490, %v38_v15   ;;  %v2525_v15 = vld [vmem:[%s3570_s3 + $0x13c] ss:$8 sps:$4 sm:$0xff]  }
  0x15   :  { %207 = vperm.xlu1 %2491, %v39_v16  }
  0x18   :  { %226 = vrot.lane.b32.xlu0 %v2494_v3, %s2695_s20  ;;  %v2514_v3 = vld [vmem:[%s3570_s3 + $0x108] ss:$8 sps:$4 sm:$0xff]  }
  0x19   :  { %228 = vrot.lane.b32.xlu1 %v2495_v5, %s2695_s20  ;;  %v2519_v5 = vld [vmem:[%s3570_s3 + $0x11c] ss:$8 sps:$4 sm:$0xff]  }
  0x1a   :  { %2432 = vmatmul.mubr.msk.bf16.gmra.mrb[4].mxu0 %vm92_vm0, %v2793_v14 }
  0x1b   :  { %412 = vmatprep.mubr.bf16.mxu0 %v2694_v1 }
  0x83   :  { %v2810_v22 = vpop.permute.xlu0 %172 }
  0x84   :  { %v2812_v23 = vpop.permute.xlu1 %182 }
  0x87   :  { %v2814_v24 = vpop.permute.xlu0 %177 }
  0x88   :  { %v2816_v25 = vpop.permute.xlu1 %187 }
  0x8b   :  { %v223_v26 = vpop.permute.xlu0 %222 }
  0x8c   :  { %v2818_v27 = vpop.permute.xlu1 %192 }
  0x8f   :  { %v2820_v31 = vpop.permute.xlu0 %197 }
  0x90   :  { %v225_v35 = vpop.permute.xlu1 %224 }
  0x93   :  { %v2833_v44 = vpop.permute.xlu0 %202 }
  0x94   :  { %v2836_v47 = vpop.permute.xlu1 %207 }
  0x97   :  { %v227_v62 = vpop.permute.xlu0 %226 }
  0x98   :  { %v229_v7 = vpop.permute.xlu1 %228 }
  0xe5   :  { %v2429_v28 = vpop.f32.mrb[0].mxu0 }
  0xe6   :  { %v139_v29 = vpop.f32.mrb[1].mxu0  ;;  %v212_v32 = vmul.f32 %v2429_v28, %v2812_v23  ;;  %v2532_v28 = vld [vmem:[%s3570_s3 + $0x168] ss:$8 sps:$4 sm:$0xff]  }
  0xe7   :  { %v2430_v30 = vpop.f32.mrb[2].mxu0  ;;  %v210_v36 = vmul.f32 %v2810_v22, %v139_v29  ;;  %v2537_v29 = vld [vmem:[%s3570_s3 + $0x17c] ss:$8 sps:$4 sm:$0xff]  }
  0xe8   :  { %v213_v33 = vmul.f32 %v2430_v30, %v2816_v25  ;;  %v142_v34 = vpop.f32.mrb[3].mxu0  ;;  %v2535_v30 = vld [vmem:[%s3570_s3 + $0x178] ss:$8 sps:$4 sm:$0xff]  }
  0xe9   :  { %v211_v37 = vmul.f32 %v2814_v24, %v142_v34 }
  0xea   :  { %v219_v38 = vpack.c.bf16 %v213_v33, %v212_v32  ;;  %v2540_v32 = vld [vmem:[%s3570_s3 + $0xc] ss:$8 sps:$4 sm:$0xff]   ;;  %v252_v33 = vlaneseq }
  0xeb   :  { %v218_v39 = vpack.c.bf16 %v211_v37, %v210_v36  ;;  %v250_v36 = vld [vmem:[%s3571_s5] ss:$4 sm:$0x3] }
  0xec   :  { %v236_v58 = vsel %vm230_vm2, %v219_v38, %v225_v35  ;;  %v253_v34 = vshrl.u32 %v252_v33, 7 }
  0xed   :  { %v2433_v41 = vpop.f32.mrb[4].mxu0  ;;  %v233_v42 = vsel %vm230_vm2, %v218_v39, %v223_v26  ;;  %v246_v61 = vsel %vm243_vm3, %v236_v58, 0  ;;  %v2534_v26 = vld [vmem:[%s3570_s3 + $0x16c] ss:$8 sps:$4 sm:$0xff]  }
  0xee   :  { %v155_v45 = vpop.f32.mrb[5].mxu0  ;;  %v245_v46 = vsel %vm243_vm3, %v233_v42, 0  ;;  %v216_v49 = vmul.f32 %v2433_v41, %v2833_v44  ;;  %v2921_v35 = vsub.s32 0, %v253_v34  ;;  %v2926_v37 = vsub.s32 1, %v253_v34  ;;  %v2552_v34 = vld [vmem:[%s3570_s3 + $0x4c] ss:$8 sps:$4 sm:$0xff]  }
  0xef   :  { %v2434_v48 = vpop.f32.mrb[6].mxu0  ;;  %2256 = vmatmul.mubr.msk.bf16.vlgmr.msra.gmra.mrb[0].mxu1 %vm267_vm4, %v245_v46  ;;  %v214_v53 = vmul.f32 %v2818_v27, %v155_v45 }
  0xf0   :  { %v217_v50 = vmul.f32 %v2434_v48, %v2836_v47  ;;  %v158_v51 = vpop.f32.mrb[7].mxu0  ;;  %325 = vmatprep.mubr.bf16.mxu1 %v2694_v1  ;;  %658 = vmatpush1.bf16.msra.mxu1 %v2502_v40  ;;  %v2929_v38 = vrot.slane %v250_v36, %v2921_v35  ;;  %v2932_v39 = vrot.slane %v250_v36, %v2926_v37 }
  0xf1   :  { %v215_v54 = vmul.f32 %v2820_v31, %v158_v51  ;;  %659 = vmatprep.subr.bf16.mxu1 %v2507_v43 }
  0xf2   :  { %v221_v56 = vpack.c.bf16 %v217_v50, %v216_v49 }
  0xf3   :  { %v220_v57 = vpack.c.bf16 %v215_v54, %v214_v53 }
  0xf4   :  { %660 = vmatpush1.bf16.msra.mxu1 %v2505_v52  ;;  %v242_v11 = vsel %vm230_vm2, %v221_v56, %v229_v7  ;;  %v2546_v7 = vld [vmem:[%s3570_s3 + $0x2c] ss:$8 sps:$4 sm:$0xff]  }
  0xf5   :  { %661 = vmatprep.subr.bf16.mxu1 %v2510_v55  ;;  %v239_v2 = vsel %vm230_vm2, %v220_v57, %v227_v62  ;;  %v248_v16 = vsel %vm243_vm3, %v242_v11, 0  ;;  %v2538_v57 = vld [vmem:[%s3570_s3 + $0x8] ss:$8 sps:$4 sm:$0xff]  }
  0xf6   :  { %v247_v6 = vsel %vm243_vm3, %v239_v2, 0 }
  0xf7   :  { %2257 = vmatmul.mubr.msk.bf16.gmra.mrb[4].mxu1 %vm267_vm4, %v246_v61 }
  0xf8   :  { %335 = vmatprep.mubr.bf16.mxu1 %v2694_v1  ;;  %662 = vmatpush1.bf16.msra.mxu1 %v2508_v59 }
  0xf9   :  { %663 = vmatprep.subr.bf16.mxu1 %v2513_v60  ;;  %v2543_v60 = vld [vmem:[%s3570_s3 + $0x1c] ss:$8 sps:$4 sm:$0xff]  }
  0xfc   :  { %664 = vmatpush1.bf16.msra.mxu1 %v2511_v63 }
  0xfd   :  { %665 = vmatprep.subr.bf16.mxu1 %v2516_v0 }
  0xff   :  { %2258 = vmatmul.mubr.msk.bf16.gmra.mrb[8].mxu1 %vm267_vm4, %v247_v6 }
 0x100   :  { %345 = vmatprep.mubr.bf16.mxu1 %v2694_v1  ;;  %666 = vmatpush1.bf16.msra.mxu1 %v2514_v3  ;;  %v2541_v3 = vld [vmem:[%s3570_s3 + $0x18] ss:$8 sps:$4 sm:$0xff]  }
 0x101   :  { %667 = vmatprep.subr.bf16.mxu1 %v2519_v5 }
 0x104   :  { %668 = vmatpush1.bf16.msra.mxu1 %v2517_v8 }
 0x105   :  { %669 = vmatprep.subr.bf16.mxu1 %v2522_v9 }
 0x107   :  { %2259 = vmatmul.mubr.msk.bf16.gmra.mrb[12].mxu1 %vm267_vm4, %v248_v16  ;;  %v2544_v16 = vld [vmem:[%s3570_s3 + $0x28] ss:$8 sps:$4 sm:$0xff]  }
 0x108   :  { %670 = vmatpush1.bf16.msra.mxu1 %v2520_v13 }
 0x109   :  { %671 = vmatprep.subr.bf16.mxu1 %v2525_v15 }
 0x10c   :  { %672 = vmatpush1.bf16.msra.mxu1 %v2523_v17 }
 0x10d   :  { %673 = vmatprep.subr.bf16.mxu1 %v2528_v18 }
 0x110   :  { %674 = vmatpush1.bf16.msra.mxu1 %v2526_v19  ;;  %v2549_v19 = vld [vmem:[%s3570_s3 + $0x3c] ss:$8 sps:$4 sm:$0xff]  }
 0x111   :  { %675 = vmatprep.subr.bf16.mxu1 %v2531_v20 }
 0x114   :  { %676 = vmatpush1.bf16.msra.mxu1 %v2529_v21 }
 0x115   :  { %677 = vmatprep.subr.bf16.mxu1 %v2534_v26 }
 0x118   :  { %678 = vmatpush1.bf16.msra.mxu1 %v2532_v28 }
 0x119   :  { %679 = vmatprep.subr.bf16.mxu1 %v2537_v29 }
 0x11c   :  { %680 = vmatpush1.bf16.msra.mxu1 %v2535_v30  ;;  %v2547_v30 = vld [vmem:[%s3570_s3 + $0x38] ss:$8 sps:$4 sm:$0xff]  }
 0x11d   :  { %862 = vmatprep.subr.bf16.mxu1 %v2540_v32 }
 0x1c2   :  { %v317_v40 = vpop.f32.mrb[0].mxu1 }
 0x1c3   :  { %v318_v41 = vadd.f32 %v317_v40, %v2929_v38  ;;  %v319_v42 = vpop.f32.mrb[1].mxu1 }
 0x1c4   :  { %v320_v43 = vadd.f32 %v319_v42, %v2932_v39  ;;  %v321_v45 = vpop.f32.mrb[2].mxu1 }
 0x1c5   :  { %v322_v46 = vadd.f32 %v321_v45, %v2929_v38  ;;  %v323_v48 = vpop.f32.mrb[3].mxu1  ;;  %v356_v50 = vmax.f32 %v318_v41, 0.0  ;;  %v2550_v45 = vld [vmem:[%s3570_s3 + $0x48] ss:$8 sps:$4 sm:$0xff]  }
 0x1c6   :  { %v324_v49 = vadd.f32 %v323_v48, %v2932_v39  ;;  %v357_v52 = vmax.f32 %v320_v43, 0.0 }
 0x1c7   :  { %v358_v51 = vmax.f32 %v322_v46, 0.0 }
 0x1c8   :  { %v359_v53 = vmax.f32 %v324_v49, 0.0  ;;  %v2555_v49 = vld [vmem:[%s3570_s3 + $0x5c] ss:$8 sps:$4 sm:$0xff]  }
 0x1c9   :  { %v372_v54 = vpack.c.bf16 %v358_v51, %v356_v50 }
 0x1ca   :  { %v373_v55 = vpack.c.bf16 %v359_v53, %v357_v52  ;;  %v327_v56 = vpop.f32.mrb[4].mxu1 }
 0x1cb   :  { %v328_v58 = vadd.f32 %v327_v56, %v2929_v38  ;;  %v329_v59 = vpop.f32.mrb[5].mxu1 }
 0x1cc   :  { %v330_v61 = vadd.f32 %v329_v59, %v2932_v39  ;;  %v331_v62 = vpop.f32.mrb[6].mxu1  ;;  %380 = vmatprep.subr.bf16.mxu0 %v373_v55  ;;  %2288 = vmatprep.mubr.msk.bf16.mxu1 %vm92_vm0, %v373_v55  ;;  %v2553_v55 = vld [vmem:[%s3570_s3 + $0x58] ss:$8 sps:$4 sm:$0xff]  }
 0x1cd   :  { %v332_v63 = vadd.f32 %v331_v62, %v2929_v38  ;;  %v333_v0 = vpop.f32.mrb[7].mxu1  ;;  %381 = vmatpush1.bf16.msra.mxu0 %v372_v54  ;;  %690 = vmatmul.mubr.bf16.vlgmr.msra.gmra.mrb[16].mxu1 %v372_v54  ;;  %v360_v5 = vmax.f32 %v328_v58, 0.0  ;;  %v2558_v58 = vld [vmem:[%s3570_s3 + $0x6c] ss:$8 sps:$4 sm:$0xff]   ;;  %v2561_v62 = vld [vmem:[%s3570_s3 + $0x7c] ss:$8 sps:$4 sm:$0xff]  }
 0x1ce   :  { %v334_v2 = vadd.f32 %v333_v0, %v2932_v39  ;;  %863 = vmatpush1.bf16.msra.mxu1 %v2538_v57  ;;  %v361_v8 = vmax.f32 %v330_v61, 0.0  ;;  %v2564_v0 = vld [vmem:[%s3570_s3 + $0x8c] ss:$8 sps:$4 sm:$0xff]  }
 0x1cf   :  { %v362_v6 = vmax.f32 %v332_v63, 0.0  ;;  %864 = vmatprep.subr.bf16.mxu1 %v2543_v60  ;;  %v2559_v63 = vld [vmem:[%s3570_s3 + $0x78] ss:$8 sps:$4 sm:$0xff]  }
 0x1d0   :  { %v363_v9 = vmax.f32 %v334_v2, 0.0  ;;  %v2562_v2 = vld [vmem:[%s3570_s3 + $0x88] ss:$8 sps:$4 sm:$0xff]  }
 0x1d1   :  { %v374_v11 = vpack.c.bf16 %v362_v6, %v360_v5  ;;  %v2565_v5 = vld [vmem:[%s3570_s3 + $0x98] ss:$8 sps:$4 sm:$0xff]   ;;  %v2570_v6 = vld [vmem:[%s3570_s3 + $0xac] ss:$8 sps:$4 sm:$0xff]  }
 0x1d2   :  { %v375_v13 = vpack.c.bf16 %v363_v9, %v361_v8  ;;  %v337_v15 = vpop.f32.mrb[8].mxu1  ;;  %865 = vmatpush1.bf16.msra.mxu1 %v2541_v3  ;;  %v2567_v3 = vld [vmem:[%s3570_s3 + $0x9c] ss:$8 sps:$4 sm:$0xff]   ;;  %v2571_v9 = vld [vmem:[%s3570_s3 + $0xb8] ss:$8 sps:$4 sm:$0xff]  }
 0x1d3   :  { %v338_v17 = vadd.f32 %v337_v15, %v2929_v38  ;;  %v339_v18 = vpop.f32.mrb[9].mxu1  ;;  %866 = vmatprep.subr.bf16.mxu1 %v2546_v7  ;;  %v2568_v7 = vld [vmem:[%s3570_s3 + $0xa8] ss:$8 sps:$4 sm:$0xff]   ;;  %v2573_v8 = vld [vmem:[%s3570_s3 + $0xbc] ss:$8 sps:$4 sm:$0xff]  }
 0x1d4   :  { %v340_v20 = vadd.f32 %v339_v18, %v2932_v39  ;;  %v341_v21 = vpop.f32.mrb[10].mxu1  ;;  %382 = vmatprep.subr.bf16.mxu0 %v375_v13  ;;  %2289 = vmatprep.mubr.msk.bf16.mxu1 %vm92_vm0, %v375_v13 }
 0x1d5   :  { %v342_v26 = vadd.f32 %v341_v21, %v2929_v38  ;;  %v343_v28 = vpop.f32.mrb[11].mxu1  ;;  %383 = vmatpush1.bf16.msra.mxu0 %v374_v11  ;;  %700 = vmatmul.mubr.bf16.gmra.mrb[20].mxu1 %v374_v11  ;;  %v364_v32 = vmax.f32 %v338_v17, 0.0 }
 0x1d6   :  { %v344_v29 = vadd.f32 %v343_v28, %v2932_v39  ;;  %867 = vmatpush1.bf16.msra.mxu1 %v2544_v16  ;;  %v365_v36 = vmax.f32 %v340_v20, 0.0 }
 0x1d7   :  { %v366_v33 = vmax.f32 %v342_v26, 0.0  ;;  %868 = vmatprep.subr.bf16.mxu1 %v2549_v19 }
 0x1d8   :  { %v367_v40 = vmax.f32 %v344_v29, 0.0 }
 0x1d9   :  { %v376_v41 = vpack.c.bf16 %v366_v33, %v364_v32 }
 0x1da   :  { %v377_v42 = vpack.c.bf16 %v367_v40, %v365_v36  ;;  %v347_v43 = vpop.f32.mrb[12].mxu1  ;;  %869 = vmatpush1.bf16.msra.mxu1 %v2547_v30 }
 0x1db   :  { %v348_v46 = vadd.f32 %v347_v43, %v2929_v38  ;;  %v349_v48 = vpop.f32.mrb[13].mxu1  ;;  %870 = vmatprep.subr.bf16.mxu1 %v2552_v34 }
 0x1dc   :  { %v350_v50 = vadd.f32 %v349_v48, %v2932_v39  ;;  %v351_v51 = vpop.f32.mrb[14].mxu1  ;;  %384 = vmatprep.subr.bf16.mxu0 %v377_v42  ;;  %2290 = vmatprep.mubr.msk.bf16.mxu1 %vm92_vm0, %v377_v42 }
 0x1dd   :  { %v352_v52 = vadd.f32 %v351_v51, %v2929_v38  ;;  %v353_v53 = vpop.f32.mrb[15].mxu1  ;;  %385 = vmatpush1.bf16.msra.mxu0 %v376_v41  ;;  %710 = vmatmul.mubr.bf16.gmra.mrb[24].mxu1 %v376_v41  ;;  %v368_v56 = vmax.f32 %v348_v46, 0.0 }
 0x1de   :  { %v354_v54 = vadd.f32 %v353_v53, %v2932_v39  ;;  %871 = vmatpush1.bf16.msra.mxu1 %v2550_v45  ;;  %v369_v59 = vmax.f32 %v350_v50, 0.0  ;;  %v2556_v39 = vld [vmem:[%s3570_s3 + $0x68] ss:$8 sps:$4 sm:$0xff]  }
 0x1df   :  { %v370_v57 = vmax.f32 %v352_v52, 0.0  ;;  %872 = vmatprep.subr.bf16.mxu1 %v2555_v49 }
 0x1e0   :  { %v371_v60 = vmax.f32 %v354_v54, 0.0 }
 0x1e1   :  { %v378_v38 = vpack.c.bf16 %v370_v57, %v368_v56 }
 0x1e2   :  { %v379_v61 = vpack.c.bf16 %v371_v60, %v369_v59  ;;  %873 = vmatpush1.bf16.msra.mxu1 %v2553_v55 }
 0x1e3   :  { %874 = vmatprep.subr.bf16.mxu1 %v2558_v58 }
 0x1e4   :  { %386 = vmatprep.subr.bf16.mxu0 %v379_v61  ;;  %2291 = vmatprep.mubr.msk.bf16.mxu1 %vm92_vm0, %v379_v61 }
 0x1e5   :  { %387 = vmatpush1.bf16.msra.mxu0 %v378_v38  ;;  %720 = vmatmul.mubr.bf16.gmra.mrb[28].mxu1 %v378_v38 }
 0x1e6   :  { %875 = vmatpush1.bf16.msra.mxu1 %v2556_v39 }
 0x1e7   :  { %876 = vmatprep.subr.bf16.mxu1 %v2561_v62 }
 0x1e8   :  { %2260 = vmatmul.mubr.msk.bf16.vlgmr.msra.gmra.mrb[8].mxu0 %vm92_vm0, %v2751_v4 }
 0x1e9   :  { %422 = vmatprep.mubr.bf16.mxu0 %v2694_v1 }
 0x1ea   :  { %877 = vmatpush1.bf16.msra.mxu1 %v2559_v63  ;;  %v2320_v63 = vld [vmem:[%s3571_s5 + $0x1] ss:$4 sm:$0x3] }
 0x1eb   :  { %878 = vmatprep.subr.bf16.mxu1 %v2564_v0  ;;  %v941_v0 = vrot.slane %v2320_v63, %v2921_v35 }
 0x1ee   :  { %879 = vmatpush1.bf16.msra.mxu1 %v2562_v2  ;;  %v945_v2 = vrot.slane %v2320_v63, %v2926_v37 }
 0x1ef   :  { %880 = vmatprep.subr.bf16.mxu1 %v2567_v3 }
 0x1f0   :  { %2261 = vmatmul.mubr.msk.bf16.gmra.mrb[12].mxu0 %vm92_vm0, %v2773_v10 }
 0x1f1   :  { %432 = vmatprep.mubr.bf16.mxu0 %v2694_v1 }
 0x1f2   :  { %881 = vmatpush1.bf16.msra.mxu1 %v2565_v5 }
 0x1f3   :  { %882 = vmatprep.subr.bf16.mxu1 %v2570_v6 }
 0x1f6   :  { %883 = vmatpush1.bf16.msra.mxu1 %v2568_v7 }
 0x1f7   :  { %884 = vmatprep.subr.bf16.mxu1 %v2573_v8 }
 0x1f8   :  { %2262 = vmatmul.mubr.msk.bf16.gmra.mrb[16].mxu0 %vm92_vm0, %v2781_v12 }
 0x1f9   :  { %442 = vmatprep.mubr.bf16.mxu0 %v2694_v1 }
 0x1fa   :  { %885 = vmatpush1.bf16.msra.mxu1 %v2571_v9 }
 0x1fb   :  { %1704 = vmatprep.subr.bf16.mxu1 %v2694_v1 }
 0x200   :  { %2263 = vmatmul.mubr.msk.bf16.gmra.mrb[20].mxu0 %vm92_vm0, %v2793_v14 }
 0x201   :  { %1020 = vmatprep.mubr.bf16.mxu0 %v2694_v1 }
 0x2bb   :  { %v414_v11 = vpop.f32.mrb[8].mxu0 }
 0x2bc   :  { %v416_v13 = vpop.f32.mrb[9].mxu0  ;;  %v453_v16 = vmul.f32 %v414_v11, %v2810_v22 }
 0x2bd   :  { %v418_v15 = vpop.f32.mrb[10].mxu0  ;;  %v454_v19 = vmul.f32 %v416_v13, %v2810_v22 }
 0x2be   :  { %v455_v17 = vmul.f32 %v418_v15, %v2814_v24  ;;  %v420_v18 = vpop.f32.mrb[11].mxu0 }
 0x2bf   :  { %v456_v20 = vmul.f32 %v420_v18, %v2814_v24 }
 0x2c0   :  { %v469_v21 = vpack.c.bf16 %v455_v17, %v453_v16 }
 0x2c1   :  { %v470_v26 = vpack.c.bf16 %v456_v20, %v454_v19 }
 0x2c3   :  { %v424_v28 = vpop.f32.mrb[12].mxu0  ;;  %2316 = vmatprep.mubr.msk.bf16.mxu1 %vm92_vm0, %v470_v26 }
 0x2c4   :  { %v426_v29 = vpop.f32.mrb[13].mxu0  ;;  %895 = vmatmul.mubr.bf16.vlgmr.msra.gmra.mrb[16].mxu1 %v469_v21  ;;  %v457_v32 = vmul.f32 %v424_v28, %v2812_v23 }
 0x2c5   :  { %v428_v30 = vpop.f32.mrb[14].mxu0  ;;  %v458_v36 = vmul.f32 %v426_v29, %v2812_v23 }
 0x2c6   :  { %v459_v33 = vmul.f32 %v428_v30, %v2816_v25  ;;  %v430_v34 = vpop.f32.mrb[15].mxu0 }
 0x2c7   :  { %v460_v40 = vmul.f32 %v430_v34, %v2816_v25 }
 0x2c8   :  { %v471_v41 = vpack.c.bf16 %v459_v33, %v457_v32 }
 0x2c9   :  { %v472_v42 = vpack.c.bf16 %v460_v40, %v458_v36 }
 0x2cb   :  { %v434_v43 = vpop.f32.mrb[16].mxu0  ;;  %2317 = vmatprep.mubr.msk.bf16.mxu1 %vm92_vm0, %v472_v42 }
 0x2cc   :  { %v436_v45 = vpop.f32.mrb[17].mxu0  ;;  %905 = vmatmul.mubr.bf16.gmra.mrb[20].mxu1 %v471_v41  ;;  %v461_v48 = vmul.f32 %v434_v43, %v2818_v27 }
 0x2cd   :  { %v438_v46 = vpop.f32.mrb[18].mxu0  ;;  %v462_v51 = vmul.f32 %v436_v45, %v2818_v27 }
 0x2ce   :  { %v463_v49 = vmul.f32 %v438_v46, %v2820_v31  ;;  %v440_v50 = vpop.f32.mrb[19].mxu0 }
 0x2cf   :  { %v464_v52 = vmul.f32 %v440_v50, %v2820_v31 }
 0x2d0   :  { %v473_v53 = vpack.c.bf16 %v463_v49, %v461_v48 }
 0x2d1   :  { %v474_v54 = vpack.c.bf16 %v464_v52, %v462_v51 }
 0x2d3   :  { %v444_v55 = vpop.f32.mrb[20].mxu0  ;;  %2318 = vmatprep.mubr.msk.bf16.mxu1 %vm92_vm0, %v474_v54 }
 0x2d4   :  { %v446_v56 = vpop.f32.mrb[21].mxu0  ;;  %915 = vmatmul.mubr.bf16.gmra.mrb[24].mxu1 %v473_v53  ;;  %v465_v58 = vmul.f32 %v444_v55, %v2833_v44 }
 0x2d5   :  { %v448_v57 = vpop.f32.mrb[22].mxu0  ;;  %v466_v38 = vmul.f32 %v446_v56, %v2833_v44 }
 0x2d6   :  { %v467_v59 = vmul.f32 %v448_v57, %v2836_v47  ;;  %v450_v60 = vpop.f32.mrb[23].mxu0 }
 0x2d7   :  { %v468_v61 = vmul.f32 %v450_v60, %v2836_v47 }
 0x2d8   :  { %v475_v39 = vpack.c.bf16 %v467_v59, %v465_v58 }
 0x2d9   :  { %v476_v62 = vpack.c.bf16 %v468_v61, %v466_v38 }
 0x2db   :  { %2319 = vmatprep.mubr.msk.bf16.mxu1 %vm92_vm0, %v476_v62 }
 0x2dc   :  { %925 = vmatmul.mubr.bf16.gmra.mrb[28].mxu1 %v475_v39 }
 0x397   :  { %v896_v3 = vpop.f32.mrb[16].mxu1 }
 0x398   :  { %v948_v5 = vadd.f32 %v941_v0, %v896_v3  ;;  %v898_v6 = vpop.f32.mrb[17].mxu1 }
 0x399   :  { %v949_v7 = vadd.f32 %v945_v2, %v898_v6  ;;  %v900_v8 = vpop.f32.mrb[18].mxu1 }
 0x39a   :  { %v950_v9 = vadd.f32 %v941_v0, %v900_v8  ;;  %v902_v11 = vpop.f32.mrb[19].mxu1  ;;  %v964_v15 = vmax.f32 %v948_v5, 0.0 }
 0x39b   :  { %v951_v13 = vadd.f32 %v945_v2, %v902_v11  ;;  %v965_v17 = vmax.f32 %v949_v7, 0.0 }
 0x39c   :  { %v966_v16 = vmax.f32 %v950_v9, 0.0 }
 0x39d   :  { %v967_v18 = vmax.f32 %v951_v13, 0.0 }
 0x39e   :  { %v3061_v19 = vpack.c.bf16 %v966_v16, %v964_v15  ;;  %v2576_v16 = vld [vmem:[%s3570_s3 + $0x24c] ss:$8 sps:$4 sm:$0xff]  }
 0x39f   :  { %v3063_v20 = vpack.c.bf16 %v967_v18, %v965_v17  ;;  %v906_v21 = vpop.f32.mrb[20].mxu1  ;;  %v2577_v17 = vld [vmem:[%s3570_s3 + $0x258] ss:$8 sps:$4 sm:$0xff]   ;;  %v2582_v18 = vld [vmem:[%s3570_s3 + $0x26c] ss:$8 sps:$4 sm:$0xff]  }
 0x3a0   :  { %v952_v26 = vadd.f32 %v941_v0, %v906_v21  ;;  %v908_v28 = vpop.f32.mrb[21].mxu1  ;;  %v2580_v21 = vld [vmem:[%s3570_s3 + $0x268] ss:$8 sps:$4 sm:$0xff]  }
 0x3a1   :  { %v953_v29 = vadd.f32 %v945_v2, %v908_v28  ;;  %v910_v30 = vpop.f32.mrb[22].mxu1  ;;  %988 = vmatprep.subr.bf16.mxu0 %v3063_v20  ;;  %v2588_v28 = vld [vmem:[%s3570_s3 + $0x28c] ss:$8 sps:$4 sm:$0xff]  }
 0x3a2   :  { %v954_v32 = vadd.f32 %v941_v0, %v910_v30  ;;  %v912_v33 = vpop.f32.mrb[23].mxu1  ;;  %989 = vmatpush1.bf16.msra.mxu0 %v3061_v19  ;;  %v968_v36 = vmax.f32 %v952_v26, 0.0  ;;  %v2583_v26 = vld [vmem:[%s3570_s3 + $0x278] ss:$8 sps:$4 sm:$0xff]  }
 0x3a3   :  { %v955_v34 = vadd.f32 %v945_v2, %v912_v33  ;;  %v969_v41 = vmax.f32 %v953_v29, 0.0  ;;  %v2586_v29 = vld [vmem:[%s3570_s3 + $0x288] ss:$8 sps:$4 sm:$0xff]   ;;  %v2589_v30 = vld [vmem:[%s3570_s3 + $0x298] ss:$8 sps:$4 sm:$0xff]  }
 0x3a4   :  { %v970_v40 = vmax.f32 %v954_v32, 0.0  ;;  %v2594_v32 = vld [vmem:[%s3570_s3 + $0x2ac] ss:$8 sps:$4 sm:$0xff]   ;;  %v2592_v33 = vld [vmem:[%s3570_s3 + $0x2a8] ss:$8 sps:$4 sm:$0xff]  }
 0x3a5   :  { %v971_v42 = vmax.f32 %v955_v34, 0.0  ;;  %v2595_v34 = vld [vmem:[%s3570_s3 + $0x2b8] ss:$8 sps:$4 sm:$0xff]  }
 0x3a6   :  { %v3067_v43 = vpack.c.bf16 %v970_v40, %v968_v36  ;;  %v2600_v36 = vld [vmem:[%s3570_s3 + $0x2cc] ss:$8 sps:$4 sm:$0xff]   ;;  %v2598_v40 = vld [vmem:[%s3570_s3 + $0x2c8] ss:$8 sps:$4 sm:$0xff]  }
 0x3a7   :  { %v3069_v45 = vpack.c.bf16 %v971_v42, %v969_v41  ;;  %v916_v46 = vpop.f32.mrb[24].mxu1  ;;  %v2606_v41 = vld [vmem:[%s3570_s3 + $0x2ec] ss:$8 sps:$4 sm:$0xff]   ;;  %v2604_v42 = vld [vmem:[%s3570_s3 + $0x2e8] ss:$8 sps:$4 sm:$0xff]  }
 0x3a8   :  { %v956_v48 = vadd.f32 %v941_v0, %v916_v46  ;;  %v918_v49 = vpop.f32.mrb[25].mxu1  ;;  %v2609_v46 = vld [vmem:[%s3570_s3 + $0x2fc] ss:$8 sps:$4 sm:$0xff]  }
 0x3a9   :  { %v957_v50 = vadd.f32 %v945_v2, %v918_v49  ;;  %v920_v51 = vpop.f32.mrb[26].mxu1  ;;  %990 = vmatprep.subr.bf16.mxu0 %v3069_v45  ;;  %v2612_v49 = vld [vmem:[%s3570_s3 + $0x18c] ss:$8 sps:$4 sm:$0xff]  }
 0x3aa   :  { %v958_v52 = vadd.f32 %v941_v0, %v920_v51  ;;  %v922_v53 = vpop.f32.mrb[27].mxu1  ;;  %991 = vmatpush1.bf16.msra.mxu0 %v3067_v43  ;;  %v972_v55 = vmax.f32 %v956_v48, 0.0  ;;  %v2607_v48 = vld [vmem:[%s3570_s3 + $0x2f8] ss:$8 sps:$4 sm:$0xff]   ;;  %v2615_v51 = vld [vmem:[%s3570_s3 + $0x19c] ss:$8 sps:$4 sm:$0xff]  }
 0x3ab   :  { %v959_v54 = vadd.f32 %v945_v2, %v922_v53  ;;  %v973_v57 = vmax.f32 %v957_v50, 0.0  ;;  %v2610_v50 = vld [vmem:[%s3570_s3 + $0x188] ss:$8 sps:$4 sm:$0xff]   ;;  %v2618_v53 = vld [vmem:[%s3570_s3 + $0x1ac] ss:$8 sps:$4 sm:$0xff]  }
 0x3ac   :  { %v974_v56 = vmax.f32 %v958_v52, 0.0  ;;  %v2613_v52 = vld [vmem:[%s3570_s3 + $0x198] ss:$8 sps:$4 sm:$0xff]  }
 0x3ad   :  { %v975_v58 = vmax.f32 %v959_v54, 0.0  ;;  %v2616_v54 = vld [vmem:[%s3570_s3 + $0x1a8] ss:$8 sps:$4 sm:$0xff]  }
 0x3ae   :  { %v3073_v59 = vpack.c.bf16 %v974_v56, %v972_v55  ;;  %v2624_v55 = vld [vmem:[%s3570_s3 + $0x1cc] ss:$8 sps:$4 sm:$0xff]   ;;  %v2622_v56 = vld [vmem:[%s3570_s3 + $0x1c8] ss:$8 sps:$4 sm:$0xff]  }
 0x3af   :  { %v3075_v60 = vpack.c.bf16 %v975_v58, %v973_v57  ;;  %v926_v38 = vpop.f32.mrb[28].mxu1  ;;  %v2625_v57 = vld [vmem:[%s3570_s3 + $0x1d8] ss:$8 sps:$4 sm:$0xff]   ;;  %v2630_v58 = vld [vmem:[%s3570_s3 + $0x1ec] ss:$8 sps:$4 sm:$0xff]  }
 0x3b0   :  { %v960_v61 = vadd.f32 %v941_v0, %v926_v38  ;;  %v928_v39 = vpop.f32.mrb[29].mxu1  ;;  %v2631_v38 = vld [vmem:[%s3570_s3 + $0x1f8] ss:$8 sps:$4 sm:$0xff]  }
 0x3b1   :  { %v961_v62 = vadd.f32 %v945_v2, %v928_v39  ;;  %v930_v63 = vpop.f32.mrb[30].mxu1  ;;  %992 = vmatprep.subr.bf16.mxu0 %v3075_v60  ;;  %v2634_v39 = vld [vmem:[%s3570_s3 + $0x208] ss:$8 sps:$4 sm:$0xff]  }
 0x3b2   :  { %v962_v3 = vadd.f32 %v941_v0, %v930_v63  ;;  %v932_v5 = vpop.f32.mrb[31].mxu1  ;;  %993 = vmatpush1.bf16.msra.mxu0 %v3073_v59  ;;  %v976_v7 = vmax.f32 %v960_v61, 0.0  ;;  %v2574_v0 = vld [vmem:[%s3570_s3 + $0x248] ss:$8 sps:$4 sm:$0xff]   ;;  %v2636_v61 = vld [vmem:[%s3570_s3 + $0x20c] ss:$8 sps:$4 sm:$0xff]  }
 0x3b3   :  { %v963_v6 = vadd.f32 %v945_v2, %v932_v5  ;;  %v977_v9 = vmax.f32 %v961_v62, 0.0  ;;  %v2579_v2 = vld [vmem:[%s3570_s3 + $0x25c] ss:$8 sps:$4 sm:$0xff]   ;;  %v2637_v63 = vld [vmem:[%s3570_s3 + $0x218] ss:$8 sps:$4 sm:$0xff]  }
 0x3b4   :  { %v978_v8 = vmax.f32 %v962_v3, 0.0  ;;  %v2639_v62 = vld [vmem:[%s3570_s3 + $0x21c] ss:$8 sps:$4 sm:$0xff]   ;;  %v2642_v3 = vld [vmem:[%s3570_s3 + $0x22c] ss:$8 sps:$4 sm:$0xff]  }
 0x3b5   :  { %v979_v11 = vmax.f32 %v963_v6, 0.0  ;;  %v2640_v5 = vld [vmem:[%s3570_s3 + $0x228] ss:$8 sps:$4 sm:$0xff]   ;;  %v2645_v6 = vld [vmem:[%s3570_s3 + $0x23c] ss:$8 sps:$4 sm:$0xff]  }
 0x3b6   :  { %v3079_v13 = vpack.c.bf16 %v978_v8, %v976_v7  ;;  %v2643_v7 = vld [vmem:[%s3570_s3 + $0x238] ss:$8 sps:$4 sm:$0xff]  }
 0x3b7   :  { %v3081_v15 = vpack.c.bf16 %v979_v11, %v977_v9  ;;  %v2646_v8 = vld [vmem:[%s3572_s4] sm:$0xff]   ;;  %v2647_v9 = vld [vmem:[%s3572_s4 + $0x8] sm:$0xff]   ;;  %v2648_v11 = vld [vmem:[%s3572_s4 + $0x10] sm:$0xff]  }
 0x3b8   :  { %1705 = vmatpush1.bf16.msra.mxu1 %v2646_v8 }
 0x3b9   :  { %994 = vmatprep.subr.bf16.mxu0 %v3081_v15  ;;  %1706 = vmatprep.subr.bf16.mxu1 %v2694_v1 }
 0x3ba   :  { %995 = vmatpush1.bf16.msra.mxu0 %v3079_v13 }
 0x3bb   :  { %1265 = vmatprep.subr.bf16.mxu0 %v2576_v16  ;;  %v2651_v16 = vld [vmem:[%s3572_s4 + $0x28] sm:$0xff]  }
 0x3bc   :  { %1707 = vmatpush1.bf16.msra.mxu1 %v2647_v9 }
 0x3bd   :  { %2321 = vmatmul.mubr.msk.bf16.vlgmr.msra.gmra.mrb[24].mxu0 %vm92_vm0, %v2751_v4  ;;  %v2585_v4 = vld [vmem:[%s3570_s3 + $0x27c] ss:$8 sps:$4 sm:$0xff]   ;;  %1708 = vmatprep.subr.bf16.mxu1 %v2694_v1 }
 0x3be   :  { %1266 = vmatpush1.bf16.msra.mxu0 %v2574_v0  ;;  %1030 = vmatprep.mubr.bf16.mxu0 %v2694_v1  ;;  %v2652_v0 = vld [vmem:[%s3572_s4 + $0x30] sm:$0xff]  }
 0x3bf   :  { %1267 = vmatprep.subr.bf16.mxu0 %v2579_v2  ;;  %v2653_v2 = vld [vmem:[%s3572_s4 + $0x38] sm:$0xff]  }
 0x3c0   :  { %1709 = vmatpush1.bf16.msra.mxu1 %v2648_v11 }
 0x3c1   :  { %1710 = vmatprep.subr.bf16.mxu1 %v2694_v1 }
 0x3c2   :  { %1268 = vmatpush1.bf16.msra.mxu0 %v2577_v17  ;;  %v2654_v17 = vld [vmem:[%s3572_s4 + $0x40] sm:$0xff]  }
 0x3c3   :  { %1269 = vmatprep.subr.bf16.mxu0 %v2582_v18 }
 0x3c5   :  { %2322 = vmatmul.mubr.msk.bf16.gmra.mrb[28].mxu0 %vm92_vm0, %v2773_v10  ;;  %v2591_v10 = vld [vmem:[%s3570_s3 + $0x29c] ss:$8 sps:$4 sm:$0xff]  }
 0x3c6   :  { %1270 = vmatpush1.bf16.msra.mxu0 %v2580_v21  ;;  %1040 = vmatprep.mubr.bf16.mxu0 %v2694_v1 }
 0x3c7   :  { %1271 = vmatprep.subr.bf16.mxu0 %v2585_v4 }
 0x3ca   :  { %1272 = vmatpush1.bf16.msra.mxu0 %v2583_v26 }
 0x3cb   :  { %1273 = vmatprep.subr.bf16.mxu0 %v2588_v28 }
 0x3cd   :  { %2323 = vmatmul.mubr.msk.bf16.gmra.mrb[32].mxu0 %vm92_vm0, %v2781_v12  ;;  %v2597_v12 = vld [vmem:[%s3570_s3 + $0x2bc] ss:$8 sps:$4 sm:$0xff]  }
 0x3ce   :  { %1274 = vmatpush1.bf16.msra.mxu0 %v2586_v29  ;;  %1050 = vmatprep.mubr.bf16.mxu0 %v2694_v1 }
 0x3cf   :  { %1275 = vmatprep.subr.bf16.mxu0 %v2591_v10 }
 0x3d2   :  { %1276 = vmatpush1.bf16.msra.mxu0 %v2589_v30 }
 0x3d3   :  { %1277 = vmatprep.subr.bf16.mxu0 %v2594_v32 }
 0x3d5   :  { %2324 = vmatmul.mubr.msk.bf16.gmra.mrb[36].mxu0 %vm92_vm0, %v2793_v14  ;;  %v2603_v14 = vld [vmem:[%s3570_s3 + $0x2dc] ss:$8 sps:$4 sm:$0xff]  }
 0x3d6   :  { %1278 = vmatpush1.bf16.msra.mxu0 %v2592_v33  ;;  %2349 = vmatprep.mubr.msk.bf16.mxu0 %vm92_vm0, %v3063_v20  ;;  %v2601_v20 = vld [vmem:[%s3570_s3 + $0x2d8] ss:$8 sps:$4 sm:$0xff]  }
 0x3d7   :  { %1279 = vmatprep.subr.bf16.mxu0 %v2597_v12 }
 0x3da   :  { %1280 = vmatpush1.bf16.msra.mxu0 %v2595_v34 }
 0x3db   :  { %1281 = vmatprep.subr.bf16.mxu0 %v2600_v36 }
 0x3de   :  { %1282 = vmatpush1.bf16.msra.mxu0 %v2598_v40 }
 0x3df   :  { %1283 = vmatprep.subr.bf16.mxu0 %v2603_v14 }
 0x3e2   :  { %1284 = vmatpush1.bf16.msra.mxu0 %v2601_v20 }
 0x3e3   :  { %1285 = vmatprep.subr.bf16.mxu0 %v2606_v41 }
 0x3e6   :  { %1286 = vmatpush1.bf16.msra.mxu0 %v2604_v42 }
 0x3e7   :  { %1287 = vmatprep.subr.bf16.mxu0 %v2609_v46 }
 0x3ea   :  { %1288 = vmatpush1.bf16.msra.mxu0 %v2607_v48 }
 0x3eb   :  { %1470 = vmatprep.subr.bf16.mxu0 %v2612_v49 }
 0x3ed   :  { %1298 = vmatmul.mubr.bf16.vlgmr.msra.gmra.mrb[40].mxu0 %v3061_v19  ;;  %v2621_v19 = vld [vmem:[%s3570_s3 + $0x1bc] ss:$8 sps:$4 sm:$0xff]  }
 0x3ee   :  { %2350 = vmatprep.mubr.msk.bf16.mxu0 %vm92_vm0, %v3069_v45  ;;  %1471 = vmatpush1.bf16.msra.mxu0 %v2610_v50  ;;  %v2619_v45 = vld [vmem:[%s3570_s3 + $0x1b8] ss:$8 sps:$4 sm:$0xff]  }
 0x3ef   :  { %1472 = vmatprep.subr.bf16.mxu0 %v2615_v51 }
 0x3f2   :  { %1473 = vmatpush1.bf16.msra.mxu0 %v2613_v52 }
 0x3f3   :  { %1474 = vmatprep.subr.bf16.mxu0 %v2618_v53 }
 0x3f5   :  { %1308 = vmatmul.mubr.bf16.gmra.mrb[44].mxu0 %v3067_v43  ;;  %v2627_v43 = vld [vmem:[%s3570_s3 + $0x1dc] ss:$8 sps:$4 sm:$0xff]  }
 0x3f6   :  { %2351 = vmatprep.mubr.msk.bf16.mxu0 %vm92_vm0, %v3075_v60  ;;  %1475 = vmatpush1.bf16.msra.mxu0 %v2616_v54  ;;  %v2628_v60 = vld [vmem:[%s3570_s3 + $0x1e8] ss:$8 sps:$4 sm:$0xff]  }
 0x3f7   :  { %1476 = vmatprep.subr.bf16.mxu0 %v2621_v19 }
 0x3fa   :  { %1477 = vmatpush1.bf16.msra.mxu0 %v2619_v45 }
 0x3fb   :  { %1478 = vmatprep.subr.bf16.mxu0 %v2624_v55 }
 0x3fd   :  { %1318 = vmatmul.mubr.bf16.gmra.mrb[48].mxu0 %v3073_v59  ;;  %v2633_v59 = vld [vmem:[%s3570_s3 + $0x1fc] ss:$8 sps:$4 sm:$0xff]  }
 0x3fe   :  { %2352 = vmatprep.mubr.msk.bf16.mxu0 %vm92_vm0, %v3081_v15  ;;  %1479 = vmatpush1.bf16.msra.mxu0 %v2622_v56  ;;  %v2650_v15 = vld [vmem:[%s3572_s4 + $0x20] sm:$0xff]  }
 0x3ff   :  { %1480 = vmatprep.subr.bf16.mxu0 %v2627_v43 }
 0x402   :  { %1481 = vmatpush1.bf16.msra.mxu0 %v2625_v57 }
 0x403   :  { %1482 = vmatprep.subr.bf16.mxu0 %v2630_v58 }
 0x405   :  { %1328 = vmatmul.mubr.bf16.gmra.mrb[52].mxu0 %v3079_v13  ;;  %v2649_v13 = vld [vmem:[%s3572_s4 + $0x18] sm:$0xff]  }
 0x406   :  { %1483 = vmatpush1.bf16.msra.mxu0 %v2628_v60  ;;  %1711 = vmatpush1.bf16.msra.mxu1 %v2649_v13 }
 0x407   :  { %1484 = vmatprep.subr.bf16.mxu0 %v2633_v59  ;;  %1712 = vmatprep.subr.bf16.mxu1 %v2694_v1 }
 0x40a   :  { %1485 = vmatpush1.bf16.msra.mxu0 %v2631_v38  ;;  %1713 = vmatpush1.bf16.msra.mxu1 %v2650_v15 }
 0x40b   :  { %1486 = vmatprep.subr.bf16.mxu0 %v2636_v61  ;;  %1714 = vmatprep.subr.bf16.mxu1 %v2694_v1 }
 0x40e   :  { %1487 = vmatpush1.bf16.msra.mxu0 %v2634_v39  ;;  %1715 = vmatpush1.bf16.msra.mxu1 %v2651_v16 }
 0x40f   :  { %1488 = vmatprep.subr.bf16.mxu0 %v2639_v62  ;;  %1716 = vmatprep.subr.bf16.mxu1 %v2694_v1 }
 0x412   :  { %1489 = vmatpush1.bf16.msra.mxu0 %v2637_v63  ;;  %1717 = vmatpush1.bf16.msra.mxu1 %v2652_v0 }
 0x413   :  { %1490 = vmatprep.subr.bf16.mxu0 %v2642_v3  ;;  %1718 = vmatprep.subr.bf16.mxu1 %v2694_v1  ;;  %v2655_v3 = vld [vmem:[%s3572_s4 + $0x48] sm:$0xff]  }
 0x416   :  { %1491 = vmatpush1.bf16.msra.mxu0 %v2640_v5  ;;  %1719 = vmatpush1.bf16.msra.mxu1 %v2653_v2  ;;  %v2656_v5 = vld [vmem:[%s3572_s4 + $0x50] sm:$0xff]  }
 0x417   :  { %1492 = vmatprep.subr.bf16.mxu0 %v2645_v6  ;;  %1720 = vmatprep.subr.bf16.mxu1 %v2694_v1  ;;  %v2657_v6 = vld [vmem:[%s3572_s4 + $0x58] sm:$0xff]  }
 0x41a   :  { %1493 = vmatpush1.bf16.msra.mxu0 %v2643_v7  ;;  %1721 = vmatpush1.bf16.msra.mxu1 %v2654_v17  ;;  %v2381_v7 = vld [vmem:[%s3571_s5 + $0x2] ss:$4 sm:$0x3] }
 0x41b   :  { %1722 = vmatprep.subr.bf16.mxu1 %v2694_v1  ;;  %v1549_v8 = vrot.slane %v2381_v7, %v2921_v35  ;;  %v1553_v9 = vrot.slane %v2381_v7, %v2926_v37 }
 0x41e   :  { %1723 = vmatpush1.bf16.msra.mxu1 %v2655_v3 }
 0x41f   :  { %1724 = vmatprep.subr.bf16.mxu1 %v2694_v1 }
 0x422   :  { %1725 = vmatpush1.bf16.msra.mxu1 %v2656_v5 }
 0x423   :  { %1726 = vmatprep.subr.bf16.mxu1 %v2694_v1 }
 0x426   :  { %1727 = vmatpush1.bf16.msra.mxu1 %v2657_v6 }
 0x490   :  { %v1022_v18 = vpop.f32.mrb[24].mxu0 }
 0x491   :  { %v1024_v21 = vpop.f32.mrb[25].mxu0  ;;  %v1061_v26 = vmul.f32 %v1022_v18, %v2810_v22 }
 0x492   :  { %v1026_v4 = vpop.f32.mrb[26].mxu0  ;;  %v1062_v10 = vmul.f32 %v1024_v21, %v2810_v22 }
 0x493   :  { %v1063_v28 = vmul.f32 %v1026_v4, %v2814_v24  ;;  %v1028_v29 = vpop.f32.mrb[27].mxu0 }
 0x494   :  { %v1064_v30 = vmul.f32 %v1028_v29, %v2814_v24 }
 0x495   :  { %v1077_v32 = vpack.c.bf16 %v1063_v28, %v1061_v26 }
 0x496   :  { %v1078_v33 = vpack.c.bf16 %v1064_v30, %v1062_v10 }
 0x498   :  { %v1032_v12 = vpop.f32.mrb[28].mxu0  ;;  %2377 = vmatprep.mubr.msk.bf16.mxu0 %vm92_vm0, %v1078_v33 }
 0x499   :  { %v1034_v34 = vpop.f32.mrb[29].mxu0  ;;  %1503 = vmatmul.mubr.bf16.vlgmr.msra.gmra.mrb[40].mxu0 %v1077_v32  ;;  %v1065_v40 = vmul.f32 %v1032_v12, %v2812_v23 }
 0x49a   :  { %v1036_v36 = vpop.f32.mrb[30].mxu0  ;;  %v1066_v41 = vmul.f32 %v1034_v34, %v2812_v23 }
 0x49b   :  { %v1067_v14 = vmul.f32 %v1036_v36, %v2816_v25  ;;  %v1038_v20 = vpop.f32.mrb[31].mxu0 }
 0x49c   :  { %v1068_v42 = vmul.f32 %v1038_v20, %v2816_v25 }
 0x49d   :  { %v1079_v46 = vpack.c.bf16 %v1067_v14, %v1065_v40 }
 0x49e   :  { %v1080_v48 = vpack.c.bf16 %v1068_v42, %v1066_v41 }
 0x4a0   :  { %v1042_v49 = vpop.f32.mrb[32].mxu0  ;;  %2378 = vmatprep.mubr.msk.bf16.mxu0 %vm92_vm0, %v1080_v48 }
 0x4a1   :  { %v1044_v50 = vpop.f32.mrb[33].mxu0  ;;  %1513 = vmatmul.mubr.bf16.gmra.mrb[44].mxu0 %v1079_v46  ;;  %v1069_v52 = vmul.f32 %v1042_v49, %v2818_v27 }
 0x4a2   :  { %v1046_v51 = vpop.f32.mrb[34].mxu0  ;;  %v1070_v19 = vmul.f32 %v1044_v50, %v2818_v27 }
 0x4a3   :  { %v1071_v53 = vmul.f32 %v1046_v51, %v2820_v31  ;;  %v1048_v54 = vpop.f32.mrb[35].mxu0 }
 0x4a4   :  { %v1072_v45 = vmul.f32 %v1048_v54, %v2820_v31 }
 0x4a5   :  { %v1081_v55 = vpack.c.bf16 %v1071_v53, %v1069_v52 }
 0x4a6   :  { %v1082_v56 = vpack.c.bf16 %v1072_v45, %v1070_v19 }
 0x4a8   :  { %v1052_v43 = vpop.f32.mrb[36].mxu0  ;;  %2379 = vmatprep.mubr.msk.bf16.mxu0 %vm92_vm0, %v1082_v56 }
 0x4a9   :  { %v1054_v57 = vpop.f32.mrb[37].mxu0  ;;  %1523 = vmatmul.mubr.bf16.gmra.mrb[48].mxu0 %v1081_v55  ;;  %v1073_v60 = vmul.f32 %v1052_v43, %v2833_v44 }
 0x4aa   :  { %v1056_v58 = vpop.f32.mrb[38].mxu0  ;;  %v1074_v61 = vmul.f32 %v1054_v57, %v2833_v44 }
 0x4ab   :  { %v1075_v59 = vmul.f32 %v1056_v58, %v2836_v47  ;;  %v1058_v38 = vpop.f32.mrb[39].mxu0 }
 0x4ac   :  { %v1076_v39 = vmul.f32 %v1058_v38, %v2836_v47 }
 0x4ad   :  { %v1083_v62 = vpack.c.bf16 %v1075_v59, %v1073_v60 }
 0x4ae   :  { %v1084_v63 = vpack.c.bf16 %v1076_v39, %v1074_v61 }
 0x4b0   :  { %2380 = vmatprep.mubr.msk.bf16.mxu0 %vm92_vm0, %v1084_v63 }
 0x4b1   :  { %1533 = vmatmul.mubr.bf16.gmra.mrb[52].mxu0 %v1083_v62 }
 0x56c   :  { %v1504_v11 = vpop.f32.mrb[40].mxu0 }
 0x56d   :  { %v1556_v13 = vadd.f32 %v1549_v8, %v1504_v11  ;;  %v1506_v15 = vpop.f32.mrb[41].mxu0 }
 0x56e   :  { %v1557_v16 = vadd.f32 %v1553_v9, %v1506_v15  ;;  %v1508_v0 = vpop.f32.mrb[42].mxu0  ;;  %v2690_v15 = vld [vmem:[%s3568_s0] sm:$0xff]  }
 0x56f   :  { %v1558_v2 = vadd.f32 %v1549_v8, %v1508_v0  ;;  %v1510_v1 = vpop.f32.mrb[43].mxu0  ;;  %v1572_v18 = vmax.f32 %v1556_v13, 0.0 }
 0x570   :  { %v1559_v17 = vadd.f32 %v1553_v9, %v1510_v1  ;;  %v1573_v4 = vmax.f32 %v1557_v16, 0.0 }
 0x571   :  { %v1574_v21 = vmax.f32 %v1558_v2, 0.0 }
 0x572   :  { %v1575_v26 = vmax.f32 %v1559_v17, 0.0 }
 0x573   :  { %v1588_v28 = vpack.c.bf16 %v1574_v21, %v1572_v18 }
 0x574   :  { %v1589_v29 = vpack.c.bf16 %v1575_v26, %v1573_v4  ;;  %v1514_v10 = vpop.f32.mrb[44].mxu0 }
 0x575   :  { %v1560_v30 = vadd.f32 %v1549_v8, %v1514_v10  ;;  %v1516_v32 = vpop.f32.mrb[45].mxu0 }
 0x576   :  { %v1561_v35 = vadd.f32 %v1553_v9, %v1516_v32  ;;  %v1518_v33 = vpop.f32.mrb[46].mxu0  ;;  %2394 = vmatprep.mubr.msk.bf16.mxu1 %vm92_vm0, %v1589_v29 }
 0x577   :  { %v1562_v37 = vadd.f32 %v1549_v8, %v1518_v33  ;;  %v1520_v12 = vpop.f32.mrb[47].mxu0  ;;  %1737 = vmatmul.mubr.bf16.vlgmr.msra.gmra.mrb[32].mxu1 %v1588_v28  ;;  %v1576_v36 = vmax.f32 %v1560_v30, 0.0 }
 0x578   :  { %v1563_v34 = vadd.f32 %v1553_v9, %v1520_v12  ;;  %v1577_v14 = vmax.f32 %v1561_v35, 0.0 }
 0x579   :  { %v1578_v40 = vmax.f32 %v1562_v37, 0.0 }
 0x57a   :  { %v1579_v20 = vmax.f32 %v1563_v34, 0.0  ;;  %v2691_v34 = vld [vmem:[%s3568_s0 + $0x8] sm:$0xff]  }
 0x57b   :  { %v1590_v41 = vpack.c.bf16 %v1578_v40, %v1576_v36  ;;  %v2692_v36 = vld [vmem:[%s3568_s0 + $0x10] sm:$0xff]   ;;  %v2693_v40 = vld [vmem:[%s3568_s0 + $0x18] sm:$0xff]   ;;  %s2697_s0 = smov 1  }
 0x57c   :  { %v1591_v42 = vpack.c.bf16 %v1579_v20, %v1577_v14  ;;  %v1524_v46 = vpop.f32.mrb[48].mxu0 }
 0x57d   :  { %v1564_v48 = vadd.f32 %v1549_v8, %v1524_v46  ;;  %v1526_v49 = vpop.f32.mrb[49].mxu0 }
 0x57e   :  { %v1565_v50 = vadd.f32 %v1553_v9, %v1526_v49  ;;  %v1528_v51 = vpop.f32.mrb[50].mxu0  ;;  %2395 = vmatprep.mubr.msk.bf16.mxu1 %vm92_vm0, %v1591_v42 }
 0x57f   :  { %v1566_v52 = vadd.f32 %v1549_v8, %v1528_v51  ;;  %v1530_v53 = vpop.f32.mrb[51].mxu0  ;;  %1745 = vmatmul.mubr.bf16.gmra.mrb[36].mxu1 %v1590_v41  ;;  %v1580_v19 = vmax.f32 %v1564_v48, 0.0  ;;  %v2402_v51 = vld [vmem:[%s3571_s5 + $0x3] ss:$0 sm:$0xff]  ;;  %s2698_s5 = smov 126  }
 0x580   :  { %v1567_v54 = vadd.f32 %v1553_v9, %v1530_v53  ;;  %v1581_v55 = vmax.f32 %v1565_v50, 0.0 }
 0x581   :  { %v1582_v45 = vmax.f32 %v1566_v52, 0.0 }
 0x582   :  { %v1583_v56 = vmax.f32 %v1567_v54, 0.0 }
 0x583   :  { %v1592_v43 = vpack.c.bf16 %v1582_v45, %v1580_v19 }
 0x584   :  { %v1593_v57 = vpack.c.bf16 %v1583_v56, %v1581_v55  ;;  %v1534_v58 = vpop.f32.mrb[52].mxu0 }
 0x585   :  { %v1568_v60 = vadd.f32 %v1549_v8, %v1534_v58  ;;  %v1536_v59 = vpop.f32.mrb[53].mxu0 }
 0x586   :  { %v1569_v38 = vadd.f32 %v1553_v9, %v1536_v59  ;;  %v1538_v61 = vpop.f32.mrb[54].mxu0  ;;  %2396 = vmatprep.mubr.msk.bf16.mxu1 %vm92_vm0, %v1593_v57 }
 0x587   :  { %v1570_v39 = vadd.f32 %v1549_v8, %v1538_v61  ;;  %v1540_v62 = vpop.f32.mrb[55].mxu0  ;;  %1753 = vmatmul.mubr.bf16.gmra.mrb[40].mxu1 %v1592_v43  ;;  %v1584_v3 = vmax.f32 %v1568_v60, 0.0 }
 0x588   :  { %v1571_v63 = vadd.f32 %v1553_v9, %v1540_v62  ;;  %v1585_v6 = vmax.f32 %v1569_v38, 0.0 }
 0x589   :  { %v1586_v5 = vmax.f32 %v1570_v39, 0.0 }
 0x58a   :  { %v1587_v7 = vmax.f32 %v1571_v63, 0.0 }
 0x58b   :  { %v1594_v11 = vpack.c.bf16 %v1586_v5, %v1584_v3 }
 0x58c   :  { %v1595_v13 = vpack.c.bf16 %v1587_v7, %v1585_v6 }
 0x58e   :  { %2397 = vmatprep.mubr.msk.bf16.mxu1 %vm92_vm0, %v1595_v13 }
 0x58f   :  { %1761 = vmatmul.mubr.bf16.gmra.mrb[44].mxu1 %v1594_v11 }
 0x590   :  { %2443 = vmatprep.mubr.msk.bf16.mxu1 %vm92_vm0, %v2690_v15 }
 0x64a   :  { %v1738_v16 = vpop.f32.mrb[32].mxu1 }
 0x64b   :  { %1854 = vrot.lane.b32.xlu0 %v1738_v16, %s2696_s19  ;;  %v1740_v8 = vpop.f32.mrb[33].mxu1 }
 0x64c   :  { %v1741_v9 = vpop.f32.mrb[34].mxu1 }
 0x64d   :  { %v1769_v0 = vpack.c.bf16 %v1741_v9, %v1738_v16  ;;  %1856 = vrot.lane.b32.xlu1 %v1741_v9, %s2696_s19  ;;  %v1743_v2 = vpop.f32.mrb[35].mxu1 }
 0x64f   :  { %2435 = vmatprep.subr.bf16.mxu1 %v1769_v0 }
 0x650   :  { %2436 = vmatpush3.bf16.msra.mxu1 %v1769_v0 }
 0x652   :  { %v1746_v1 = vpop.f32.mrb[36].mxu1 }
 0x653   :  { %1858 = vrot.lane.b32.xlu0 %v1746_v1, %s2696_s19  ;;  %v1748_v17 = vpop.f32.mrb[37].mxu1 }
 0x654   :  { %v1749_v18 = vpop.f32.mrb[38].mxu1 }
 0x655   :  { %v1770_v21 = vpack.c.bf16 %v1749_v18, %v1746_v1  ;;  %1860 = vrot.lane.b32.xlu1 %v1749_v18, %s2696_s19  ;;  %v1751_v4 = vpop.f32.mrb[39].mxu1 }
 0x657   :  { %2437 = vmatprep.subr.bf16.mxu1 %v1770_v21 }
 0x658   :  { %2438 = vmatpush3.bf16.msra.mxu1 %v1770_v21 }
 0x65a   :  { %v1754_v26 = vpop.f32.mrb[40].mxu1 }
 0x65b   :  { %1862 = vrot.lane.b32.xlu0 %v1754_v26, %s2696_s19  ;;  %v1756_v28 = vpop.f32.mrb[41].mxu1 }
 0x65c   :  { %v1757_v29 = vpop.f32.mrb[42].mxu1 }
 0x65d   :  { %v1771_v10 = vpack.c.bf16 %v1757_v29, %v1754_v26  ;;  %1864 = vrot.lane.b32.xlu1 %v1757_v29, %s2696_s19  ;;  %v1759_v30 = vpop.f32.mrb[43].mxu1 }
 0x65f   :  { %2439 = vmatprep.subr.bf16.mxu1 %v1771_v10 }
 0x660   :  { %2440 = vmatpush3.bf16.msra.mxu1 %v1771_v10 }
 0x662   :  { %v1762_v32 = vpop.f32.mrb[44].mxu1 }
 0x663   :  { %1866 = vrot.lane.b32.xlu0 %v1762_v32, %s2696_s19  ;;  %v1764_v35 = vpop.f32.mrb[45].mxu1 }
 0x664   :  { %v1765_v33 = vpop.f32.mrb[46].mxu1 }
 0x665   :  { %v1772_v37 = vpack.c.bf16 %v1765_v33, %v1762_v32  ;;  %1868 = vrot.lane.b32.xlu1 %v1765_v33, %s2696_s19  ;;  %v1767_v12 = vpop.f32.mrb[47].mxu1 }
 0x667   :  { %2441 = vmatprep.subr.bf16.mxu1 %v1772_v37 }
 0x668   :  { %2442 = vmatpush3.bf16.msra.mxu1 %v1772_v37 }
 0x66b   :  { %2444 = vmatmul.mubr.msk.bf16.vlgmr.msra.gmra.mrb[48].mxu1 %vm92_vm0, %v2691_v34 }
 0x66c   :  { %2447 = vmatprep.mubr.msk.bf16.mxu1 %vm92_vm0, %v2692_v36 }
 0x673   :  { %2448 = vmatmul.mubr.msk.bf16.gmra.mrb[52].mxu1 %vm92_vm0, %v2693_v40 }
 0x6bd   :  { %v1855_v14 = vpop.permute.xlu0 %1854 }
 0x6bf   :  { %v1857_v20 = vpop.permute.xlu1 %1856 }
 0x6c5   :  { %v1859_v48 = vpop.permute.xlu0 %1858 }
 0x6c7   :  { %v1861_v19 = vpop.permute.xlu1 %1860 }
 0x6cd   :  { %v1863_v58 = vpop.permute.xlu0 %1862 }
 0x6d5   :  { %v1867_v6 = vpop.permute.xlu0 %1866 }
 0x73e   :  { %v2445_v41 = vpop.f32.mrb[48].mxu1 }
 0x73f   :  { %v1840_v42 = vmul.f32 %v2445_v41, %v2812_v23  ;;  %v1807_v46 = vpop.f32.mrb[49].mxu1 }
 0x740   :  { %v1838_v49 = vmul.f32 %v1807_v46, %v2810_v22  ;;  %v2446_v50 = vpop.f32.mrb[50].mxu1 }
 0x741   :  { %v1880_v52 = vadd.f32 %v1859_v48, %v1840_v42  ;;  %v1841_v53 = vmul.f32 %v2446_v50, %v2816_v25  ;;  %v1810_v54 = vpop.f32.mrb[51].mxu1 }
 0x742   :  { %v1839_v45 = vmul.f32 %v1810_v54, %v2814_v24  ;;  %v1878_v55 = vadd.f32 %v1855_v14, %v1838_v49  ;;  %v1865_v24 = vpop.permute.xlu1 %1864 }
 0x743   :  { %v1881_v56 = vadd.f32 %v1861_v19, %v1841_v53  ;;  %v1893_v43 = vadd.f32 %v2402_v51, %v1880_v52 }
 0x744   :  { %v1879_v23 = vadd.f32 %v1857_v20, %v1839_v45  ;;  %v1891_v59 = vadd.f32 %v2402_v51, %v1878_v55 }
 0x745   :  { %1911 = vrot.lane.b32.xlu0 %v1893_v43, %s2697_s0  ;;  %v1894_v22 = vadd.f32 %v2402_v51, %v1881_v56 }
 0x746   :  { %v2449_v57 = vpop.f32.mrb[52].mxu1  ;;  %v1892_v62 = vadd.f32 %v2402_v51, %v1879_v23 }
 0x747   :  { %1913 = vrot.lane.b32.xlu1 %v1894_v22, %s2697_s0  ;;  %v1823_v60 = vpop.f32.mrb[53].mxu1  ;;  %v1844_v25 = vmul.f32 %v2449_v57, %v2833_v44  ;;  %v1869_v44 = vpop.permute.xlu1 %1868 }
 0x748   :  { %v1842_v38 = vmul.f32 %v1823_v60, %v2818_v27  ;;  %v2450_v61 = vpop.f32.mrb[54].mxu1 }
 0x749   :  { %1907 = vrot.lane.b32.xlu0 %v1891_v59, %s2697_s0  ;;  %v1826_v39 = vpop.f32.mrb[55].mxu1  ;;  %v1845_v3 = vmul.f32 %v2450_v61, %v2836_v47  ;;  %v1884_v7 = vadd.f32 %v1867_v6, %v1844_v25 }
 0x74a   :  { %v1882_v63 = vadd.f32 %v1863_v58, %v1842_v38  ;;  %v1843_v5 = vmul.f32 %v1826_v39, %v2820_v31 }
 0x74b   :  { %1909 = vrot.lane.b32.xlu1 %v1892_v62, %s2697_s0  ;;  %v1885_v15 = vadd.f32 %v1869_v44, %v1845_v3  ;;  %v1897_v16 = vadd.f32 %v2402_v51, %v1884_v7 }
 0x74c   :  { %v1883_v11 = vadd.f32 %v1865_v24, %v1843_v5  ;;  %v1895_v13 = vadd.f32 %v2402_v51, %v1882_v63 }
 0x74d   :  { %v1898_v8 = vadd.f32 %v2402_v51, %v1885_v15 }
 0x74e   :  { %1915 = vrot.lane.b32.xlu0 %v1895_v13, %s2697_s0  ;;  %v1896_v27 = vadd.f32 %v2402_v51, %v1883_v11 }
 0x750   :  { %1917 = vrot.lane.b32.xlu1 %v1896_v27, %s2697_s0 }
 0x752   :  { %1919 = vrot.lane.b32.xlu0 %v1897_v16, %s2697_s0 }
 0x754   :  { %1921 = vrot.lane.b32.xlu1 %v1898_v8, %s2697_s0 }
 0x7b7   :  { %v1912_v31 = vpop.permute.xlu0 %1911 }
 0x7b8   :  { %v3371_v47 = vsub.f32 %v1893_v43, %v1912_v31 }
 0x7b9   :  { %v1914_v9 = vpop.permute.xlu1 %1913 }
 0x7ba   :  { %v1949_v0 = vand.u32 2147483647, %v3371_v47  ;;  %v3374_v2 = vsub.f32 %v1894_v22, %v1914_v9  ;;  %v1941_v63 = vmax.f32 %v3371_v47, 0.0 }
 0x7bb   :  { %v1908_v1 = vpop.permute.xlu0 %1907 }
 0x7bc   :  { %v1957_v17 = vsub.f32 0.0, %v1949_v0  ;;  %v1950_v18 = vand.u32 2147483647, %v3374_v2  ;;  %v3377_v21 = vsub.f32 %v1891_v59, %v1908_v1  ;;  %v1942_v44 = vmax.f32 %v3374_v2, 0.0 }
 0x7bd   :  { %v1910_v4 = vpop.permute.xlu1 %1909 }
 0x7be   :  { %v1967_v26 = vmul.f32 1.442695, %v1957_v17  ;;  %v1958_v28 = vsub.f32 0.0, %v1950_v18  ;;  %v1947_v29 = vand.u32 2147483647, %v3377_v21  ;;  %v3380_v10 = vsub.f32 %v1892_v62, %v1910_v4 }
 0x7bf   :  { %v1939_v1 = vmax.f32 %v3377_v21, 0.0 }
 0x7c0   :  { %2658 = vpow2.f32 %v1967_v26  ;;  %v1969_v30 = vmul.f32 1.442695, %v1958_v28  ;;  %v1955_v32 = vsub.f32 0.0, %v1947_v29  ;;  %v1916_v35 = vpop.permute.xlu0 %1915  ;;  %v1948_v33 = vand.u32 2147483647, %v3380_v10 }
 0x7c1   :  { %v3383_v37 = vsub.f32 %v1895_v13, %v1916_v35  ;;  %v1940_v4 = vmax.f32 %v3380_v10, 0.0 }
 0x7c2   :  { %2660 = vpow2.f32 %v1969_v30  ;;  %v1963_v12 = vmul.f32 1.442695, %v1955_v32  ;;  %v1918_v34 = vpop.permute.xlu1 %1917  ;;  %v1956_v36 = vsub.f32 0.0, %v1948_v33 }
 0x7c3   :  { %v1951_v40 = vand.u32 2147483647, %v3383_v37  ;;  %v3386_v14 = vsub.f32 %v1896_v27, %v1918_v34 }
 0x7c4   :  { %2662 = vpow2.f32 %v1963_v12  ;;  %v1920_v20 = vpop.permute.xlu0 %1919  ;;  %v1965_v41 = vmul.f32 1.442695, %v1956_v36 }
 0x7c5   :  { %v1959_v42 = vsub.f32 0.0, %v1951_v40  ;;  %v1952_v46 = vand.u32 2147483647, %v3386_v14  ;;  %v3389_v48 = vsub.f32 %v1897_v16, %v1920_v20  ;;  %v1943_v20 = vmax.f32 %v3383_v37, 0.0 }
 0x7c6   :  { %v1922_v49 = vpop.permute.xlu1 %1921  ;;  %2664 = vpow2.f32 %v1965_v41 }
 0x7c7   :  { %v1971_v50 = vmul.f32 1.442695, %v1959_v42  ;;  %v1960_v51 = vsub.f32 0.0, %v1952_v46  ;;  %v3391_v52 = vsub.f32 %v1898_v8, %v1922_v49  ;;  %v1953_v53 = vand.u32 2147483647, %v3389_v48 }
 0x7c8   :  { %v1945_v35 = vmax.f32 %v3389_v48, 0.0  ;;  %v1944_v49 = vmax.f32 %v3386_v14, 0.0 }
 0x7c9   :  { %v1973_v54 = vmul.f32 1.442695, %v1960_v51  ;;  %v1954_v19 = vand.u32 2147483647, %v3391_v52  ;;  %v1961_v55 = vsub.f32 0.0, %v1953_v53  ;;  %2666 = vpow2.f32 %v1971_v50 }
 0x7ca   :  { %v2659_v45 = vpop.eup %2658  ;;  %v1946_v40 = vmax.f32 %v3391_v52, 0.0 }
 0x7cb   :  { %v1981_v56 = vadd.f32 1.0, %v2659_v45  ;;  %v1962_v43 = vsub.f32 0.0, %v1954_v19  ;;  %2668 = vpow2.f32 %v1973_v54  ;;  %v1975_v22 = vmul.f32 1.442695, %v1961_v55 }
 0x7cc   :  { %v2661_v23 = vpop.eup %2660 }
 0x7cd   :  { %2670 = vlog2.f32 %v1981_v56  ;;  %v1982_v57 = vadd.f32 1.0, %v2661_v23  ;;  %v1977_v58 = vmul.f32 1.442695, %v1962_v43 }
 0x7ce   :  { %v2663_v60 = vpop.eup %2662  ;;  %2672 = vpow2.f32 %v1975_v22 }
 0x7cf   :  { %2674 = vlog2.f32 %v1982_v57  ;;  %v1979_v59 = vadd.f32 1.0, %v2663_v60 }
 0x7d0   :  { %2676 = vpow2.f32 %v1977_v58  ;;  %v2665_v25 = vpop.eup %2664 }
 0x7d1   :  { %2678 = vlog2.f32 %v1979_v59  ;;  %v1980_v38 = vadd.f32 1.0, %v2665_v25 }
 0x7d3   :  { %2680 = vlog2.f32 %v1980_v38  ;;  %v2667_v61 = vpop.eup %2666 }
 0x7d4   :  { %v1983_v5 = vadd.f32 1.0, %v2667_v61 }
 0x7d5   :  { %v2669_v24 = vpop.eup %2668 }
 0x7d6   :  { %v1984_v16 = vadd.f32 1.0, %v2669_v24 }
 0x7d7   :  { %v2671_v39 = vpop.eup %2670 }
 0x7d8   :  { %v2673_v62 = vpop.eup %2672  ;;  %v1992_v3 = vmul.f32 0.6931472, %v2671_v39 }
 0x7d9   :  { %v2675_v6 = vpop.eup %2674  ;;  %v1985_v7 = vadd.f32 1.0, %v2673_v62 }
 0x7da   :  { %v2677_v11 = vpop.eup %2676  ;;  %v3396_v13 = vadd.f32 %v1992_v3, %v1941_v63  ;;  %v1994_v15 = vmul.f32 0.6931472, %v2675_v6 }
 0x7db   :  { %v2679_v27 = vpop.eup %2678  ;;  %2682 = vlog2.f32 %v1985_v7  ;;  %v1986_v8 = vadd.f32 1.0, %v2677_v11 }
 0x7dc   :  { %v3399_v31 = vadd.f32 %v1994_v15, %v1942_v44  ;;  %2684 = vlog2.f32 %v1983_v5  ;;  %2047 = vrot.lane.b32.xlu0 %v3396_v13, %s2698_s5  ;;  %v1988_v0 = vmul.f32 0.6931472, %v2679_v27  ;;  %v3457_v54 = vsub.f32 %v3396_v13, %v3371_v47 }
 0x7dd   :  { %2686 = vlog2.f32 %v1986_v8  ;;  %v2681_v9 = vpop.eup %2680 }
 0x7de   :  { %2049 = vrot.lane.b32.xlu1 %v3399_v31, %s2698_s5  ;;  %2688 = vlog2.f32 %v1984_v16  ;;  %v1990_v17 = vmul.f32 0.6931472, %v2681_v9  ;;  %v3408_v18 = vadd.f32 %v1988_v0, %v1939_v1 }
 0x7e0   :  { %2119 = vrot.lane.b32.xlu0 %v3396_v13, %s2699_s27  ;;  %v3413_v26 = vadd.f32 %v1990_v17, %v1940_v4  ;;  %v3445_v51 = vsub.f32 %v3408_v18, %v3377_v21  ;;  %v3463_v21 = vsub.f32 %v3399_v31, %v3374_v2 }
 0x7e2   :  { %2121 = vrot.lane.b32.xlu1 %v3399_v31, %s2699_s27  ;;  %v3451_v53 = vsub.f32 %v3413_v26, %v3380_v10 }
 0x7e4   :  { %2043 = vrot.lane.b32.xlu0 %v3408_v18, %s2698_s5 }
 0x7e5   :  { %v2683_v28 = vpop.eup %2682 }
 0x7e6   :  { %v2685_v29 = vpop.eup %2684  ;;  %v2000_v30 = vmul.f32 0.6931472, %v2683_v28  ;;  %2045 = vrot.lane.b32.xlu1 %v3413_v26, %s2698_s5 }
 0x7e7   :  { %v2687_v32 = vpop.eup %2686  ;;  %v1996_v34 = vmul.f32 0.6931472, %v2685_v29 }
 0x7e8   :  { %v2002_v33 = vmul.f32 0.6931472, %v2687_v32  ;;  %2115 = vrot.lane.b32.xlu0 %v3408_v18, %s2699_s27  ;;  %v2689_v12 = vpop.eup %2688  ;;  %v3422_v36 = vadd.f32 %v2000_v30, %v1945_v35 }
 0x7e9   :  { %v1998_v41 = vmul.f32 0.6931472, %v2689_v12  ;;  %v2007_v46 = vadd.f32 %v1996_v34, %v1943_v20 }
 0x7ea   :  { %2117 = vrot.lane.b32.xlu1 %v3413_v26, %s2699_s27  ;;  %v3428_v42 = vadd.f32 %v2002_v33, %v1946_v40  ;;  %v3469_v10 = vsub.f32 %v3422_v36, %v3389_v48 }
 0x7eb   :  { %v2008_v50 = vadd.f32 %v1998_v41, %v1944_v49  ;;  %v3492_v2 = vsub.f32 %v2007_v46, %v3383_v37 }
 0x7ec   :  { %2055 = vrot.lane.b32.xlu0 %v3422_v36, %s2698_s5  ;;  %v3483_v47 = vsub.f32 %v3428_v42, %v3391_v52 }
 0x7ed   :  { %v3497_v48 = vsub.f32 %v2008_v50, %v3386_v14 }
 0x7ee   :  { %2057 = vrot.lane.b32.xlu1 %v3428_v42, %s2698_s5 }
 0x7f0   :  { %2051 = vrot.lane.b32.xlu0 %v2007_v46, %s2698_s5 }
 0x7f2   :  { %2053 = vrot.lane.b32.xlu1 %v2008_v50, %s2698_s5 }
 0x7f4   :  { %2123 = vrot.lane.b32.xlu0 %v2007_v46, %s2699_s27 }
 0x7f6   :  { %2125 = vrot.lane.b32.xlu1 %v2008_v50, %s2699_s27 }
 0x7f8   :  { %2127 = vrot.lane.b32.xlu0 %v3422_v36, %s2699_s27 }
 0x7fa   :  { %2129 = vrot.lane.b32.xlu1 %v3428_v42, %s2699_s27 }
 0x7fc   :  { %2083 = vrot.lane.b32.xlu0 %v3445_v51, %s2698_s5 }
 0x7fe   :  { %2085 = vrot.lane.b32.xlu1 %v3451_v53, %s2698_s5 }
 0x800   :  { %2087 = vrot.lane.b32.xlu0 %v3457_v54, %s2698_s5 }
 0x802   :  { %2089 = vrot.lane.b32.xlu1 %v3463_v21, %s2698_s5 }
 0x804   :  { %2095 = vrot.lane.b32.xlu0 %v3469_v10, %s2698_s5 }
 0x806   :  { %2149 = vrot.lane.b32.xlu1 %v3451_v53, %s2699_s27 }
 0x808   :  { %2147 = vrot.lane.b32.xlu0 %v3445_v51, %s2699_s27 }
 0x80a   :  { %2153 = vrot.lane.b32.xlu1 %v3463_v21, %s2699_s27 }
 0x80c   :  { %2151 = vrot.lane.b32.xlu0 %v3457_v54, %s2699_s27 }
 0x80e   :  { %2097 = vrot.lane.b32.xlu1 %v3483_v47, %s2698_s5 }
 0x810   :  { %2159 = vrot.lane.b32.xlu0 %v3469_v10, %s2699_s27 }
 0x812   :  { %2161 = vrot.lane.b32.xlu1 %v3483_v47, %s2699_s27 }
 0x814   :  { %2091 = vrot.lane.b32.xlu0 %v3492_v2, %s2698_s5 }
 0x816   :  { %2093 = vrot.lane.b32.xlu1 %v3497_v48, %s2698_s5 }
 0x818   :  { %2155 = vrot.lane.b32.xlu0 %v3492_v2, %s2699_s27 }
 0x81a   :  { %2157 = vrot.lane.b32.xlu1 %v3497_v48, %s2699_s27 }
 0x84e   :  { %v2048_v52 = vpop.permute.xlu0 %2047 }
 0x84f   :  { %v2069_v37 = vadd.f32 %v2048_v52, %v3396_v13 }
 0x850   :  { %v2050_v19 = vpop.permute.xlu1 %2049 }
 0x851   :  { %v2070_v55 = vadd.f32 %v2050_v19, %v3399_v31 }
 0x852   :  { %v2120_v45 = vpop.permute.xlu0 %2119 }
 0x853   :  { %v2141_v56 = vadd.f32 %v2120_v45, %v2069_v37 }
 0x854   :  { %v2122_v43 = vpop.permute.xlu1 %2121 }
 0x855   :  { %v2142_v14 = vadd.f32 %v2122_v43, %v2070_v55  ;;  %2191 = vrot.lane.b32.xlu0 %v2141_v56, %s2700_s28 }
 0x856   :  { %v2044_v23 = vpop.permute.xlu0 %2043 }
 0x857   :  { %2193 = vrot.lane.b32.xlu1 %v2142_v14, %s2700_s28  ;;  %v2067_v57 = vadd.f32 %v2044_v23, %v3408_v18 }
 0x858   :  { %v2046_v22 = vpop.permute.xlu1 %2045 }
 0x859   :  { %v2068_v60 = vadd.f32 %v2046_v22, %v3413_v26 }
 0x85a   :  { %v2116_v58 = vpop.permute.xlu0 %2115 }
 0x85b   :  { %v2139_v59 = vadd.f32 %v2116_v58, %v2067_v57 }
 0x85c   :  { %v2118_v25 = vpop.permute.xlu1 %2117 }
 0x85d   :  { %v2140_v38 = vadd.f32 %v2118_v25, %v2068_v60  ;;  %2187 = vrot.lane.b32.xlu0 %v2139_v59, %s2700_s28 }
 0x85e   :  { %v2056_v61 = vpop.permute.xlu0 %2055 }
 0x85f   :  { %2189 = vrot.lane.b32.xlu1 %v2140_v38, %s2700_s28  ;;  %v2073_v11 = vadd.f32 %v2056_v61, %v3422_v36 }
 0x860   :  { %v2058_v24 = vpop.permute.xlu1 %2057 }
 0x861   :  { %v2074_v15 = vadd.f32 %v2058_v24, %v3428_v42 }
 0x862   :  { %v2052_v39 = vpop.permute.xlu0 %2051 }
 0x863   :  { %v2071_v63 = vadd.f32 %v2052_v39, %v2007_v46 }
 0x864   :  { %v2054_v62 = vpop.permute.xlu1 %2053 }
 0x865   :  { %v2072_v5 = vadd.f32 %v2054_v62, %v2008_v50 }
 0x866   :  { %v2124_v3 = vpop.permute.xlu0 %2123 }
 0x867   :  { %v2143_v6 = vadd.f32 %v2124_v3, %v2071_v63 }
 0x868   :  { %v2126_v7 = vpop.permute.xlu1 %2125 }
 0x869   :  { %v2144_v13 = vadd.f32 %v2126_v7, %v2072_v5  ;;  %2195 = vrot.lane.b32.xlu0 %v2143_v6, %s2700_s28 }
 0x86a   :  { %v2128_v44 = vpop.permute.xlu0 %2127 }
 0x86b   :  { %v2145_v27 = vadd.f32 %v2128_v44, %v2073_v11  ;;  %2197 = vrot.lane.b32.xlu1 %v2144_v13, %s2700_s28 }
 0x86c   :  { %v2130_v16 = vpop.permute.xlu1 %2129 }
 0x86d   :  { %v2146_v8 = vadd.f32 %v2130_v16, %v2074_v15  ;;  %2199 = vrot.lane.b32.xlu0 %v2145_v27, %s2700_s28 }
 0x86e   :  { %v2084_v31 = vpop.permute.xlu0 %2083 }
 0x86f   :  { %2201 = vrot.lane.b32.xlu1 %v2146_v8, %s2700_s28  ;;  %v2107_v19 = vadd.f32 %v2084_v31, %v3445_v51 }
 0x870   :  { %v2086_v9 = vpop.permute.xlu1 %2085 }
 0x872   :  { %v2088_v0 = vpop.permute.xlu0 %2087 }
 0x873   :  { %v2109_v34 = vadd.f32 %v2088_v0, %v3457_v54 }
 0x874   :  { %v2090_v1 = vpop.permute.xlu1 %2089 }
 0x875   :  { %v2110_v40 = vadd.f32 %v2090_v1, %v3463_v21  ;;  %v2108_v21 = vadd.f32 %v2086_v9, %v3451_v53 }
 0x876   :  { %v2096_v17 = vpop.permute.xlu0 %2095 }
 0x877   :  { %v2113_v60 = vadd.f32 %v2096_v17, %v3469_v10 }
 0x878   :  { %v2150_v18 = vpop.permute.xlu1 %2149 }
 0x879   :  { %v2172_v55 = vadd.f32 %v2150_v18, %v2108_v21 }
 0x87a   :  { %v2148_v4 = vpop.permute.xlu0 %2147 }
 0x87b   :  { %v2171_v37 = vadd.f32 %v2148_v4, %v2107_v19 }
 0x87c   :  { %v2154_v26 = vpop.permute.xlu1 %2153 }
 0x87d   :  { %v2174_v42 = vadd.f32 %v2154_v26, %v2110_v40 }
 0x87e   :  { %v2152_v28 = vpop.permute.xlu0 %2151 }
 0x87f   :  { %v2173_v20 = vadd.f32 %v2152_v28, %v2109_v34 }
 0x880   :  { %v2098_v29 = vpop.permute.xlu1 %2097 }
 0x881   :  { %v2114_v24 = vadd.f32 %v2098_v29, %v3483_v47 }
 0x882   :  { %v2160_v30 = vpop.permute.xlu0 %2159 }
 0x883   :  { %v2177_v39 = vadd.f32 %v2160_v30, %v2113_v60 }
 0x884   :  { %v2162_v32 = vpop.permute.xlu1 %2161 }
 0x885   :  { %v2178_v63 = vadd.f32 %v2162_v32, %v2114_v24 }
 0x886   :  { %v2092_v35 = vpop.permute.xlu0 %2091 }
 0x887   :  { %v2111_v53 = vadd.f32 %v2092_v35, %v3492_v2 }
 0x888   :  { %v2094_v33 = vpop.permute.xlu1 %2093 }
 0x889   :  { %v2112_v22 = vadd.f32 %v2094_v33, %v3497_v48 }
 0x88a   :  { %v2156_v12 = vpop.permute.xlu0 %2155 }
 0x88b   :  { %v2175_v57 = vadd.f32 %v2156_v12, %v2111_v53 }
 0x88c   :  { %v2158_v36 = vpop.permute.xlu1 %2157 }
 0x88d   :  { %v2176_v59 = vadd.f32 %v2158_v36, %v2112_v22 }
 0x8c7   :  { %v2192_v41 = vpop.permute.xlu0 %2191 }
 0x8c8   :  { %v2214_v46 = vsel %vm2211_vm5, %v2192_v41, %v2173_v20 }
 0x8c9   :  { %v2222_v49 = vmul.f32 -0.33333334, %v2214_v46  ;;  %v2194_v50 = vpop.permute.xlu1 %2193 }
 0x8ca   :  { %v2215_v52 = vsel %vm2211_vm5, %v2194_v50, %v2174_v42 }
 0x8cb   :  { %2231 = vst.msk [vmem:[%s3573_s6 + $0x10] sm:$0xff] %vm2228_vm6, %v2222_v49  ;;  %v2223_v54 = vmul.f32 -0.33333334, %v2215_v52 }
 0x8cd   :  { %2232 = vst.msk [vmem:[%s3573_s6 + $0x18] sm:$0xff] %vm2228_vm6, %v2223_v54 }
 0x8cf   :  { %v2188_v45 = vpop.permute.xlu0 %2187 }
 0x8d0   :  { %v2212_v56 = vsel %vm2211_vm5, %v2188_v45, %v2171_v37 }
 0x8d1   :  { %v2220_v43 = vmul.f32 -0.33333334, %v2212_v56  ;;  %v2190_v14 = vpop.permute.xlu1 %2189 }
 0x8d2   :  { %v2213_v23 = vsel %vm2211_vm5, %v2190_v14, %v2172_v55 }
 0x8d3   :  { %2229 = vst.msk [vmem:[%s3573_s6] sm:$0xff] %vm2228_vm6, %v2220_v43  ;;  %v2221_v51 = vmul.f32 -0.33333334, %v2213_v23 }
 0x8d5   :  { %2230 = vst.msk [vmem:[%s3573_s6 + $0x8] sm:$0xff] %vm2228_vm6, %v2221_v51 }
 0x8db   :  { %v2196_v58 = vpop.permute.xlu0 %2195 }
 0x8dc   :  { %v2216_v25 = vsel %vm2211_vm5, %v2196_v58, %v2175_v57 }
 0x8dd   :  { %v2224_v38 = vmul.f32 -0.33333334, %v2216_v25  ;;  %v2198_v61 = vpop.permute.xlu1 %2197 }
 0x8de   :  { %v2217_v62 = vsel %vm2211_vm5, %v2198_v61, %v2176_v59 }
 0x8df   :  { %2233 = vst.msk [vmem:[%s3573_s6 + $0x20] sm:$0xff] %vm2228_vm6, %v2224_v38  ;;  %v2225_v2 = vmul.f32 -0.33333334, %v2217_v62  ;;  %v2200_v48 = vpop.permute.xlu0 %2199 }
 0x8e0   :  { %v2218_v10 = vsel %vm2211_vm5, %v2200_v48, %v2177_v39 }
 0x8e1   :  { %2234 = vst.msk [vmem:[%s3573_s6 + $0x28] sm:$0xff] %vm2228_vm6, %v2225_v2  ;;  %v2226_v3 = vmul.f32 -0.33333334, %v2218_v10  ;;  %v2202_v47 = vpop.permute.xlu1 %2201 }
 0x8e2   :  { %v2219_v5 = vsel %vm2211_vm5, %v2202_v47, %v2178_v63 }
 0x8e3   :  { %2235 = vst.msk [vmem:[%s3573_s6 + $0x30] sm:$0xff] %vm2228_vm6, %v2226_v3  ;;  %v2227_v6 = vmul.f32 -0.33333334, %v2219_v5 }
 0x8e5   :  { %2236 = vst.msk [vmem:[%s3573_s6 + $0x38] sm:$0xff] %vm2228_vm6, %v2227_v6 }

</bundles_post_ra>
